<compile_context>
chip_gen: v7x
topology: tpu7x:2x2x1
jax: 0.10.0
libtpu: 0.0.40
codegen_flags: <defaults>
</compile_context>

<pallas_src>
import functools
import random

import jax
import jax.numpy as jnp
from jax.experimental import pallas as pl
from jax.experimental.pallas import tpu as pltpu


LANE = 128
SUBLANE = 8
NEG_BIG = -1e9


def _round_up(x, m):
    return ((x + m - 1) // m) * m


def _pad_axis(x, axis, new):
    pad = [(0, 0)] * x.ndim
    pad[axis] = (0, new - x.shape[axis])
    return jnp.pad(x, pad)


def _pad_gates(w, H, Hp):
    """Pad the last (4H) axis gate-block-wise: (..., 4H) -> (..., 4Hp)."""
    lead = w.shape[:-1]
    w4 = w.reshape(lead + (4, H))
    w4 = _pad_axis(w4, w4.ndim - 1, Hp)
    return w4.reshape(lead + (4 * Hp,))


def _nbytes(arrs):
    return sum(int(a.size) * int(a.dtype.itemsize) for a in arrs)


def _vmem_limit(resident_bytes):
    # sized from the actual resident tensors; never below the platform scoped
    # default (32 MiB) and capped well under physical VMEM.
    return int(min(96 * 1024 * 1024,
                   max(32 * 1024 * 1024, 2 * resident_bytes + (8 << 20))))


# ----------------------------------------------------------------------------
# Encoder recurrence: only h @ W_hh per step (x @ W_ih + b hoisted to wrapper).
# U steps are unrolled per grid iteration; padded (t >= seq_len) steps freeze
# the carried state so the final h/c stay exact.
# ----------------------------------------------------------------------------
def _encoder_kernel(gx_ref, whh_ref, out_ref, hT_ref, cT_ref, h_scr, c_scr,
                    *, hidden, unroll, seq_len):
    step = pl.program_id(0)
    H = hidden

    @pl.when(step == 0)
    def _():
        h_scr[...] = jnp.zeros_like(h_scr)
        c_scr[...] = jnp.zeros_like(c_scr)

    # Static Python loop == fully unrolled inner loop over `unroll` time steps;
    # amortizes per-grid-step overhead (~0.35us) across U steps.
    for u in range(unroll):
        t = step * unroll + u
        valid = t < seq_len
        h_prev = h_scr[...]
        c_prev = c_scr[...]
        gates = gx_ref[u] + jnp.dot(h_prev, whh_ref[...],
                                    preferred_element_type=jnp.float32)  # (B,4H)
        i = jax.nn.sigmoid(gates[:, 0:H])
        f = jax.nn.sigmoid(gates[:, H:2 * H])
        g = jnp.tanh(gates[:, 2 * H:3 * H])
        o = jax.nn.sigmoid(gates[:, 3 * H:4 * H])
        c = f * c_prev + i * g
        h = o * jnp.tanh(c)
        # freeze state on padded time steps so the final h/c are exact
        h = jnp.where(valid, h, h_prev)
        c = jnp.where(valid, c, c_prev)
        h_scr[...] = h
        c_scr[...] = c
        out_ref[u] = h                      # encoder_outputs[t] (padded rows sliced off)

    # final hidden/cell written only once, on the last grid step (saves vst slots)
    @pl.when(step == pl.num_programs(0) - 1)
    def _():
        hT_ref[...] = h_scr[...]
        cT_ref[...] = c_scr[...]


def run_encoder(gates_x, whh, hidden, seq_len, unroll, vmem_limit):
    Tsp, B, G = gates_x.shape
    H = hidden
    kern = functools.partial(_encoder_kernel, hidden=H, unroll=unroll,
                             seq_len=seq_len)
    return pl.pallas_call(
        kern,
        out_shape=(jax.ShapeDtypeStruct((Tsp, B, H), jnp.float32),
                   jax.ShapeDtypeStruct((B, H), jnp.float32),
                   jax.ShapeDtypeStruct((B, H), jnp.float32)),
        grid_spec=pltpu.PrefetchScalarGridSpec(
            num_scalar_prefetch=0,
            grid=(Tsp // unroll,),
            in_specs=[pl.BlockSpec((unroll, B, G), lambda t: (t, 0, 0)),
                      pl.BlockSpec((H, G), lambda t: (0, 0))],
            out_specs=[pl.BlockSpec((unroll, B, H), lambda t: (t, 0, 0)),
                       pl.BlockSpec((B, H), lambda t: (0, 0)),
                       pl.BlockSpec((B, H), lambda t: (0, 0))],
            scratch_shapes=[pltpu.VMEM((B, H), jnp.float32),
                            pltpu.VMEM((B, H), jnp.float32)]),
        compiler_params=pltpu.CompilerParams(
            dimension_semantics=("arbitrary",),
            vmem_limit_bytes=vmem_limit),
    )(gates_x, whh)


# ----------------------------------------------------------------------------
# Fused decode loop: attention + LSTM cell + vocab projection + token feedback.
# U decode steps per grid iteration; h / c / current-input-embedding live in
# VMEM scratch; teacher-forcing flags and target tokens live in SMEM (scalar
# prefetch); weights + encoder outputs + keys are VMEM-resident.
# ----------------------------------------------------------------------------
def _decoder_kernel(tf_ref, tgt_ref,                    # scalar prefetch (SMEM)
                    emb0_ref, h0_ref, c0_ref, enc_ref, keys_ref,
                    wa_h_ref, va_ref, emb_tbl_ref, w_dec_ref, b_dec_ref,
                    w_out_ref, b_out_ref,
                    logits_ref,
                    h_scr, c_scr, emb_scr, iota_scr,
                    *, hidden, unroll, batch):
    step = pl.program_id(0)
    H = hidden
    B = batch
    Vp = logits_ref.shape[-1]

    @pl.when(step == 0)
    def _():
        h_scr[...] = h0_ref[...]
        c_scr[...] = c0_ref[...]
        emb_scr[...] = emb0_ref[...]
        # hoisted vocab-index iota: generated once, reused by every greedy step
        iota_scr[...] = jax.lax.broadcasted_iota(jnp.int32, (B, Vp), 1)

    # Static Python loop == fully unrolled inner loop over `unroll` decode steps.
    for u in range(unroll):
        d = step * unroll + u                 # decode position over Tdec (0-based)
        h_prev = h_scr[...]                   # (B, H)
        c_prev = c_scr[...]
        emb = emb_scr[...]                    # embedding of the current input token

        # ---- additive attention (keys = enc @ W_e precomputed in the wrapper) ----
        q = jnp.dot(h_prev, wa_h_ref[...], preferred_element_type=jnp.float32)
        energy = jnp.tanh(keys_ref[...] + q[None, :, :])            # (Ts, B, H)
        scores = jnp.sum(energy * va_ref[...][None, :, :], axis=-1)  # (Ts, B)
        m = jnp.max(scores, axis=0, keepdims=True)
        p = jnp.exp(scores - m)
        attn = p * pl.reciprocal(jnp.sum(p, axis=0, keepdims=True), approx=True)
        context = jnp.sum(attn[:, :, None] * enc_ref[...], axis=0)  # (B, H)
        # TODO(synk): for Ts >> 128 switch scores/attn to a lane-dense (B, Ts)
        # layout; at Ts<=~128 the (Ts, B) layout is fine.

        # ---- fused LSTM gates: one stacked matmul [emb ; context ; h] @ W ----
        x = jnp.concatenate([emb, context, h_prev], axis=1)         # (B, E + 2H)
        gates = jnp.dot(x, w_dec_ref[...],
                        preferred_element_type=jnp.float32) + b_dec_ref[...]
        ig = jax.nn.sigmoid(gates[:, 0:H])
        fg = jax.nn.sigmoid(gates[:, H:2 * H])
        gg = jnp.tanh(gates[:, 2 * H:3 * H])
        og = jax.nn.sigmoid(gates[:, 3 * H:4 * H])
        c_new = fg * c_prev + ig * gg
        h_new = og * jnp.tanh(c_new)

        # ---- fused vocab projection on [h_new ; context] ----
        y = jnp.concatenate([h_new, context], axis=1)               # (B, 2H)
        logits = jnp.dot(y, w_out_ref[...],
                         preferred_element_type=jnp.float32) + b_out_ref[...]
        logits_ref[u] = logits
        h_scr[...] = h_new
        c_scr[...] = c_new

        # ---- next-input selection (argmax work gated off teacher-forced steps) ----
        is_teacher = tf_ref[d]                                      # SMEM scalar

        @pl.when(is_teacher != 0)
        def _():
            # teacher forcing: direct SMEM-indexed row gather from the embedding
            # table — no one-hot, no argmax, no (B, V) vregs.
            rows = [emb_tbl_ref[pl.ds(tgt_ref[d, b], 1), :] for b in range(B)]
            emb_scr[...] = jnp.concatenate(rows, axis=0)

        @pl.when(is_teacher == 0)
        def _():
            # greedy step: first-max argmax + one-hot embedding lookup (hoisted iota).
            # TODO(synk): replace the one-hot matmul with a scalar row gather once a
            # clean vector->SMEM round trip for the argmax index is available here.
            idx = iota_scr[...]                                     # (B, Vp)
            lmax = jnp.max(logits, axis=1, keepdims=True)
            cand = jnp.where(logits >= lmax, idx, Vp)
            top1 = jnp.min(cand, axis=1, keepdims=True)             # (B, 1) first max
            onehot = (idx == top1).astype(jnp.float32)              # (B, Vp)
            emb_scr[...] = jnp.dot(onehot, emb_tbl_ref[...],
                                   preferred_element_type=jnp.float32)


def run_decoder(tf_flags, tgt_tok, emb0, h0, c0, enc, keys, pp, unroll,
                vmem_limit):
    Tdp = tgt_tok.shape[0]
    B, H = h0.shape
    Ts = enc.shape[0]
    Ep = pp["tgt_emb"].shape[1]
    Vp = pp["w_out"].shape[1]
    G = 4 * H
    kern = functools.partial(_decoder_kernel, hidden=H, unroll=unroll, batch=B)

    def call(single_buffer):
        def res(shape):
            # constant-block-index residents: single-buffered so weights /
            # encoder outputs are DMA'd into VMEM exactly once (halves VMEM).
            if single_buffer:
                return pl.BlockSpec(shape, lambda i, tf, tg: (0,) * len(shape),
                                    pipeline_mode=pl.Buffered(1))
            return pl.BlockSpec(shape, lambda i, tf, tg: (0,) * len(shape))

        return pl.pallas_call(
            kern,
            out_shape=jax.ShapeDtypeStruct((Tdp, B, Vp), jnp.float32),
            grid_spec=pltpu.PrefetchScalarGridSpec(
                num_scalar_prefetch=2,                 # tf_flags, target tokens (SMEM)
                grid=(Tdp // unroll,),
                in_specs=[
                    res((B, Ep)),                      # embedding of target[0]
                    res((B, H)),                       # h0
                    res((B, H)),                       # c0
                    res((Ts, B, H)),                   # encoder outputs
                    res((Ts, B, H)),                   # attention keys
                    res((H, H)),                       # wa_h
                    res((1, H)),                       # va row
                    res((Vp, Ep)),                     # target embedding table
                    res((Ep + 2 * H, G)),              # stacked decoder gate weights
                    res((1, G)),                       # gate bias
                    res((2 * H, Vp)),                  # stacked output weights
                    res((1, Vp)),                      # output bias
                ],
                out_specs=pl.BlockSpec((unroll, B, Vp),
                                       lambda i, tf, tg: (i, 0, 0)),
                scratch_shapes=[pltpu.VMEM((B, H), jnp.float32),     # h
                                pltpu.VMEM((B, H), jnp.float32),     # c
                                pltpu.VMEM((B, Ep), jnp.float32),    # current emb
                                pltpu.VMEM((B, Vp), jnp.int32)]),    # hoisted iota
            compiler_params=pltpu.CompilerParams(
                dimension_semantics=("arbitrary",),
                vmem_limit_bytes=vmem_limit),
        )(tf_flags, tgt_tok, emb0, h0, c0, enc, keys,
          pp["wa_h"], pp["va_row"], pp["tgt_emb"], pp["w_dec"], pp["b_dec"],
          pp["w_out"], pp["b_out"])

    try:
        return call(True)
    except Exception:   # fall back if single-buffering (Buffered(1)) is rejected
        return call(False)


# ----------------------------------------------------------------------------
# Parameter padding to lane/sublane-friendly shapes (zero padding is exact:
# padded hidden/emb/vocab positions stay identically zero / never selected).
# ----------------------------------------------------------------------------
def pad_params(params):
    E = params["src_emb"].shape[1]
    H = params["enc_whh"].shape[0]
    V_tgt = params["tgt_emb"].shape[0]
    Ep = _round_up(E, LANE)
    Hp = _round_up(H, LANE)
    Vp = _round_up(V_tgt, LANE)

    src_emb = _pad_axis(params["src_emb"], 1, Ep)
    tgt_emb = _pad_axis(_pad_axis(params["tgt_emb"], 1, Ep), 0, Vp)

    enc_wih = _pad_axis(_pad_gates(params["enc_wih"], H, Hp), 0, Ep)
    enc_whh = _pad_axis(_pad_gates(params["enc_whh"], H, Hp), 0, Hp)
    enc_b = _pad_gates(params["enc_b"], H, Hp)

    wa_h = _pad_axis(_pad_axis(params["wa_h"], 0, Hp), 1, Hp)
    wa_e = _pad_axis(_pad_axis(params["wa_e"], 0, Hp), 1, Hp)
    va_row = _pad_axis(params["va"].T, 1, Hp)                    # (1, Hp)

    wih_e = _pad_axis(_pad_gates(params["wih_e"], H, Hp), 0, Ep)
    wih_c = _pad_axis(_pad_gates(params["wih_c"], H, Hp), 0, Hp)
    whh = _pad_axis(_pad_gates(params["whh"], H, Hp), 0, Hp)
    w_dec = jnp.concatenate([wih_e, wih_c, whh], axis=0)         # (Ep+2Hp, 4Hp)
    b_dec = _pad_gates(params["b"], H, Hp)

    wout_h = _pad_axis(_pad_axis(params["wout_h"], 0, Hp), 1, Vp)
    wout_c = _pad_axis(_pad_axis(params["wout_c"], 0, Hp), 1, Vp)
    w_out = jnp.concatenate([wout_h, wout_c], axis=0)            # (2Hp, Vp)
    bout = _pad_axis(params["bout"], 1, Vp)
    lane_idx = jnp.arange(Vp)[None, :]
    # padded vocab entries get a huge negative bias so greedy argmax never picks them
    b_out = jnp.where(lane_idx < V_tgt, bout, NEG_BIG).astype(jnp.float32)

    # TODO(synk): for production sizes (H~1k, V~32k) store tgt_emb / w_dec / w_out
    # / enc / keys in bf16 (f32 accumulation), add a V-tile grid axis for the vocab
    # projection, and split it across the 2 TCs on v7x; unnecessary at toy sizes.
    return dict(src_emb=src_emb, tgt_emb=tgt_emb,
                enc_wih=enc_wih, enc_whh=enc_whh, enc_b=enc_b,
                wa_h=wa_h, wa_e=wa_e, va_row=va_row,
                w_dec=w_dec, b_dec=b_dec, w_out=w_out, b_out=b_out)


# ----------------------------------------------------------------------------
# Seq2Seq.forward equivalent
# ----------------------------------------------------------------------------
def seq2seq_forward(source, target, params, teacher_forcing=0.5, seed=0,
                    enc_unroll=4, dec_unroll=4):
    """source: (T', B) int32, target: (T, B) int32 -> (T, B, V) float32."""
    T_src, B = source.shape
    T_tgt, _ = target.shape
    V_tgt = params["tgt_emb"].shape[0]
    Tdec = T_tgt - 1

    pp = pad_params(params)
    Hp = pp["enc_whh"].shape[0]
    Bp = _round_up(max(B, SUBLANE), SUBLANE)

    src_p = jnp.pad(source, ((0, 0), (0, Bp - B)))
    tgt_p = jnp.pad(target, ((0, 0), (0, Bp - B)))

    U_enc = max(1, min(enc_unroll, T_src))
    U_dec = max(1, min(dec_unroll, Tdec))
    Tsp = _round_up(T_src, U_enc)
    Tdp = _round_up(Tdec, U_dec)

    # Host-side deterministic teacher-forcing decisions (one per step t=1..T-1),
    # mirroring `random.random() < teacher_forcing`; padded trailing steps are
    # forced onto the cheap teacher path (their results are sliced away).
    rng = random.Random(seed)
    tf = [1 if rng.random() < teacher_forcing else 0 for _ in range(Tdec)]
    tf_flags = jnp.asarray(tf + [1] * (Tdp - Tdec), dtype=jnp.int32)

    # --- encoder: hoisted input projection + bias (single large matmul) ---
    emb_src = jnp.take(pp["src_emb"], src_p, axis=0)             # (T', Bp, Ep)
    gates_x = jnp.einsum("tbe,eg->tbg", emb_src, pp["enc_wih"],
                         preferred_element_type=jnp.float32) + pp["enc_b"]
    gates_x = jnp.pad(gates_x, ((0, Tsp - T_src), (0, 0), (0, 0)))

    enc_limit = _vmem_limit(_nbytes([gates_x, pp["enc_whh"]]))
    enc_out_p, h, c = run_encoder(gates_x, pp["enc_whh"], Hp, T_src, U_enc,
                                  enc_limit)
    enc_out = enc_out_p[:T_src]
    # hidden[:decoder.n_layers] — n_layers == 1, slice is identity.

    # --- attention keys hoisted out of the decode loop (computed once) ---
    keys = jnp.einsum("tbh,hk->tbk", enc_out, pp["wa_e"],
                      preferred_element_type=jnp.float32)        # (T', Bp, Hp)

    emb0 = jnp.take(pp["tgt_emb"], tgt_p[0], axis=0)             # (Bp, Ep)
    tgt_tok = jnp.pad(tgt_p[1:], ((0, Tdp - Tdec), (0, 0))).astype(jnp.int32)

    dec_resident = [emb0, h, c, enc_out, keys, pp["wa_h"], pp["va_row"],
                    pp["tgt_emb"], pp["w_dec"], pp["b_dec"], pp["w_out"],
                    pp["b_out"]]
    dec_limit = _vmem_limit(_nbytes(dec_resident))

    logits = run_decoder(tf_flags, tgt_tok, emb0, h, c, enc_out, keys, pp,
                         U_dec, dec_limit)

    out = logits[:Tdec, :B, :V_tgt]                              # strip padding
    # outputs[0] stays zero, as in the reference.
    return jnp.concatenate([jnp.zeros((1, B, V_tgt), jnp.float32), out], axis=0)


# ----------------------------------------------------------------------------
# Deterministic parameter init (synthetic weights; shapes implied by module)
# ----------------------------------------------------------------------------
def init_params(key, V_src, V_tgt, E, H):
    ks = jax.random.split(key, 15)
    s = 1.0 / float(H) ** 0.5

    def u(k, shape, scale=s):
        return jax.random.uniform(k, shape, jnp.float32, -scale, scale)

    return {
        "src_emb": u(ks[0], (V_src, E), 0.1),
        "tgt_emb": u(ks[1], (V_tgt, E), 0.1),
        # encoder LSTM
        "enc_wih": u(ks[2], (E, 4 * H)),
        "enc_whh": u(ks[3], (H, 4 * H)),
        "enc_b":   u(ks[4], (1, 4 * H)),
        # decoder attention
        "wa_h": u(ks[5], (H, H)),
        "wa_e": u(ks[6], (H, H)),
        "va":   u(ks[7], (H, 1)),
        # decoder LSTM (input = [emb ; context])
        "wih_e": u(ks[8], (E, 4 * H)),
        "wih_c": u(ks[9], (H, 4 * H)),
        "whh":   u(ks[10], (H, 4 * H)),
        "b":     u(ks[11], (1, 4 * H)),
        # vocab projection (input = [h_new ; context])
        "wout_h": u(ks[12], (H, V_tgt)),
        "wout_c": u(ks[13], (H, V_tgt)),
        "bout":   u(ks[14], (1, V_tgt)),
    }


if __name__ == "__main__":
    key = jax.random.PRNGKey(0)
    B, T_src, T_tgt = 4, 6, 8
    V_src, V_tgt, E, H = 40, 40, 32, 48   # deliberately unaligned; wrapper pads

    pk, sk, tk = jax.random.split(key, 3)
    params = init_params(pk, V_src, V_tgt, E, H)
    source = jax.random.randint(sk, (T_src, B), 0, V_src, dtype=jnp.int32)
    target = jax.random.randint(tk, (T_tgt, B), 0, V_tgt, dtype=jnp.int32)

    outputs = seq2seq_forward(source, target, params, teacher_forcing=0.5)
    outputs = jax.block_until_ready(outputs)
    assert outputs.shape == (T_tgt, B, V_tgt)
    assert bool(jnp.all(jnp.isfinite(outputs)))
    print("KERNEL_OK")
</pallas_src>

<mosaic_0001>
module attributes {stable_mosaic.version = 11 : i64} {
  func.func @_encoder_kernel(%arg0: i32, %arg1: memref<4x8x512xf32, #tpu.memory_space<vmem>>, %arg2: memref<128x512xf32, #tpu.memory_space<vmem>>, %arg3: memref<4x8x128xf32, #tpu.memory_space<vmem>>, %arg4: memref<8x128xf32, #tpu.memory_space<vmem>>, %arg5: memref<8x128xf32, #tpu.memory_space<vmem>>, %arg6: memref<8x128xf32, #tpu.memory_space<vmem>>, %arg7: memref<8x128xf32, #tpu.memory_space<vmem>>) attributes {dimension_semantics = [#tpu.dimension_semantics<arbitrary>], iteration_bounds = array<i64: 2>, scalar_prefetch = 0 : i64, scratch_operands = 2 : i64, tpu.core_type = #tpu.core_type<tc>, window_params = [{transform_indices = @transform_0, window_bounds = array<i64: 4, 8, 512>}, {pipeline_mode = #tpu.pipeline_mode<synchronous>, transform_indices = @transform_1, window_bounds = array<i64: 128, 512>}, {transform_indices = @transform_2, window_bounds = array<i64: 4, 8, 128>}, {pipeline_mode = #tpu.pipeline_mode<synchronous>, transform_indices = @transform_3, window_bounds = array<i64: 8, 128>}, {pipeline_mode = #tpu.pipeline_mode<synchronous>, transform_indices = @transform_4, window_bounds = array<i64: 8, 128>}]} {
    %c0_i32 = arith.constant 0 : i32
    %0 = arith.cmpi eq, %arg0, %c0_i32 : i32
    %1 = arith.extui %0 : i1 to i32
    %c0_i32_0 = arith.constant 0 : i32
    %2 = arith.cmpi ne, %1, %c0_i32_0 : i32
    scf.if %2 {
      %cst_85 = arith.constant 0.000000e+00 : f32
      %174 = vector.broadcast %cst_85 : f32 to vector<8x128xf32>
      %c0_86 = arith.constant 0 : index
      %c0_87 = arith.constant 0 : index
      %175 = vector.load %arg6[%c0_86, %c0_87] : memref<8x128xf32, #tpu.memory_space<vmem>>, vector<8x128xf32>
      tpu.vector_store %arg6[%c0_86, %c0_87], %174 {strides = array<i32>} : memref<8x128xf32, #tpu.memory_space<vmem>>, vector<8x128xf32>,
      %cst_88 = arith.constant 0.000000e+00 : f32
      %176 = vector.broadcast %cst_88 : f32 to vector<8x128xf32>
      %c0_89 = arith.constant 0 : index
      %c0_90 = arith.constant 0 : index
      %177 = vector.load %arg7[%c0_89, %c0_90] : memref<8x128xf32, #tpu.memory_space<vmem>>, vector<8x128xf32>
      tpu.vector_store %arg7[%c0_89, %c0_90], %176 {strides = array<i32>} : memref<8x128xf32, #tpu.memory_space<vmem>>, vector<8x128xf32>,
    } else {
    }
    %c4_i32 = arith.constant 4 : i32
    %3 = arith.muli %arg0, %c4_i32 : i32
    %c0_i32_1 = arith.constant 0 : i32
    %4 = arith.addi %3, %c0_i32_1 : i32
    %c6_i32 = arith.constant 6 : i32
    %5 = arith.cmpi slt, %4, %c6_i32 : i32
    %c0 = arith.constant 0 : index
    %c0_2 = arith.constant 0 : index
    %6 = vector.load %arg6[%c0, %c0_2] : memref<8x128xf32, #tpu.memory_space<vmem>>, vector<8x128xf32>
    %c0_3 = arith.constant 0 : index
    %c0_4 = arith.constant 0 : index
    %7 = vector.load %arg7[%c0_3, %c0_4] : memref<8x128xf32, #tpu.memory_space<vmem>>, vector<8x128xf32>
    %c0_5 = arith.constant 0 : index
    %c0_6 = arith.constant 0 : index
    %c0_7 = arith.constant 0 : index
    %8 = vector.load %arg1[%c0_5, %c0_6, %c0_7] : memref<4x8x512xf32, #tpu.memory_space<vmem>>, vector<1x8x512xf32>
    %9 = vector.shape_cast %8 : vector<1x8x512xf32> to vector<8x512xf32>
    %c0_8 = arith.constant 0 : index
    %c0_9 = arith.constant 0 : index
    %10 = vector.load %arg2[%c0_8, %c0_9] : memref<128x512xf32, #tpu.memory_space<vmem>>, vector<128x512xf32>
    %cst = arith.constant dense<0.000000e+00> : vector<8x512xf32>
    %11 = tpu.matmul %6, %10, %cst {dimension_numbers = #tpu.dot_dimension_numbers<[1], [0], [0], [1], [0, 0, 1, 1], [], []>} : vector<8x128xf32>, vector<128x512xf32>, vector<8x512xf32> -> vector<8x512xf32>
    %12 = arith.addf %9, %11 : vector<8x512xf32>
    %13 = vector.extract_strided_slice %12 {offsets = [0, 0], sizes = [8, 128], strides = [1, 1]} : vector<8x512xf32> to vector<8x128xf32>
    %14 = arith.negf %13 : vector<8x128xf32>
    %15 = math.exp %14 : vector<8x128xf32>
    %cst_10 = arith.constant 1.000000e+00 : f32
    %16 = vector.broadcast %cst_10 : f32 to vector<8x128xf32>
    %17 = arith.addf %16, %15 : vector<8x128xf32>
    %18 = arith.divf %16, %17 : vector<8x128xf32>
    %19 = vector.extract_strided_slice %12 {offsets = [0, 128], sizes = [8, 128], strides = [1, 1]} : vector<8x512xf32> to vector<8x128xf32>
    %20 = arith.negf %19 : vector<8x128xf32>
    %21 = math.exp %20 : vector<8x128xf32>
    %cst_11 = arith.constant 1.000000e+00 : f32
    %22 = vector.broadcast %cst_11 : f32 to vector<8x128xf32>
    %23 = arith.addf %22, %21 : vector<8x128xf32>
    %24 = arith.divf %22, %23 : vector<8x128xf32>
    %25 = vector.extract_strided_slice %12 {offsets = [0, 256], sizes = [8, 128], strides = [1, 1]} : vector<8x512xf32> to vector<8x128xf32>
    %26 = math.tanh %25 : vector<8x128xf32>
    %27 = vector.extract_strided_slice %12 {offsets = [0, 384], sizes = [8, 128], strides = [1, 1]} : vector<8x512xf32> to vector<8x128xf32>
    %28 = arith.negf %27 : vector<8x128xf32>
    %29 = math.exp %28 : vector<8x128xf32>
    %cst_12 = arith.constant 1.000000e+00 : f32
    %30 = vector.broadcast %cst_12 : f32 to vector<8x128xf32>
    %31 = arith.addf %30, %29 : vector<8x128xf32>
    %32 = arith.divf %30, %31 : vector<8x128xf32>
    %33 = arith.mulf %24, %7 : vector<8x128xf32>
    %34 = arith.mulf %18, %26 : vector<8x128xf32>
    %35 = arith.addf %33, %34 : vector<8x128xf32>
    %36 = math.tanh %35 : vector<8x128xf32>
    %37 = arith.mulf %32, %36 : vector<8x128xf32>
    %38 = arith.select %5, %37, %6 : vector<8x128xf32>
    %39 = arith.select %5, %35, %7 : vector<8x128xf32>
    %c0_13 = arith.constant 0 : index
    %c0_14 = arith.constant 0 : index
    %40 = vector.load %arg6[%c0_13, %c0_14] : memref<8x128xf32, #tpu.memory_space<vmem>>, vector<8x128xf32>
    tpu.vector_store %arg6[%c0_13, %c0_14], %38 {strides = array<i32>} : memref<8x128xf32, #tpu.memory_space<vmem>>, vector<8x128xf32>,
    %c0_15 = arith.constant 0 : index
    %c0_16 = arith.constant 0 : index
    %41 = vector.load %arg7[%c0_15, %c0_16] : memref<8x128xf32, #tpu.memory_space<vmem>>, vector<8x128xf32>
    tpu.vector_store %arg7[%c0_15, %c0_16], %39 {strides = array<i32>} : memref<8x128xf32, #tpu.memory_space<vmem>>, vector<8x128xf32>,
    %c0_17 = arith.constant 0 : index
    %c0_18 = arith.constant 0 : index
    %c0_19 = arith.constant 0 : index
    %42 = vector.load %arg3[%c0_17, %c0_18, %c0_19] : memref<4x8x128xf32, #tpu.memory_space<vmem>>, vector<1x8x128xf32>
    %43 = vector.shape_cast %42 : vector<1x8x128xf32> to vector<8x128xf32>
    %44 = vector.shape_cast %38 : vector<8x128xf32> to vector<1x8x128xf32>
    tpu.vector_store %arg3[%c0_17, %c0_18, %c0_19], %44 {strides = array<i32>} : memref<4x8x128xf32, #tpu.memory_space<vmem>>, vector<1x8x128xf32>,
    %c4_i32_20 = arith.constant 4 : i32
    %45 = arith.muli %arg0, %c4_i32_20 : i32
    %c1_i32 = arith.constant 1 : i32
    %46 = arith.addi %45, %c1_i32 : i32
    %c6_i32_21 = arith.constant 6 : i32
    %47 = arith.cmpi slt, %46, %c6_i32_21 : i32
    %c0_22 = arith.constant 0 : index
    %c0_23 = arith.constant 0 : index
    %48 = vector.load %arg6[%c0_22, %c0_23] : memref<8x128xf32, #tpu.memory_space<vmem>>, vector<8x128xf32>
    %c0_24 = arith.constant 0 : index
    %c0_25 = arith.constant 0 : index
    %49 = vector.load %arg7[%c0_24, %c0_25] : memref<8x128xf32, #tpu.memory_space<vmem>>, vector<8x128xf32>
    %c1 = arith.constant 1 : index
    %c0_26 = arith.constant 0 : index
    %c0_27 = arith.constant 0 : index
    %50 = vector.load %arg1[%c1, %c0_26, %c0_27] : memref<4x8x512xf32, #tpu.memory_space<vmem>>, vector<1x8x512xf32>
    %51 = vector.shape_cast %50 : vector<1x8x512xf32> to vector<8x512xf32>
    %c0_28 = arith.constant 0 : index
    %c0_29 = arith.constant 0 : index
    %52 = vector.load %arg2[%c0_28, %c0_29] : memref<128x512xf32, #tpu.memory_space<vmem>>, vector<128x512xf32>
    %cst_30 = arith.constant dense<0.000000e+00> : vector<8x512xf32>
    %53 = tpu.matmul %48, %52, %cst_30 {dimension_numbers = #tpu.dot_dimension_numbers<[1], [0], [0], [1], [0, 0, 1, 1], [], []>} : vector<8x128xf32>, vector<128x512xf32>, vector<8x512xf32> -> vector<8x512xf32>
    %54 = arith.addf %51, %53 : vector<8x512xf32>
    %55 = vector.extract_strided_slice %54 {offsets = [0, 0], sizes = [8, 128], strides = [1, 1]} : vector<8x512xf32> to vector<8x128xf32>
    %56 = arith.negf %55 : vector<8x128xf32>
    %57 = math.exp %56 : vector<8x128xf32>
    %cst_31 = arith.constant 1.000000e+00 : f32
    %58 = vector.broadcast %cst_31 : f32 to vector<8x128xf32>
    %59 = arith.addf %58, %57 : vector<8x128xf32>
    %60 = arith.divf %58, %59 : vector<8x128xf32>
    %61 = vector.extract_strided_slice %54 {offsets = [0, 128], sizes = [8, 128], strides = [1, 1]} : vector<8x512xf32> to vector<8x128xf32>
    %62 = arith.negf %61 : vector<8x128xf32>
    %63 = math.exp %62 : vector<8x128xf32>
    %cst_32 = arith.constant 1.000000e+00 : f32
    %64 = vector.broadcast %cst_32 : f32 to vector<8x128xf32>
    %65 = arith.addf %64, %63 : vector<8x128xf32>
    %66 = arith.divf %64, %65 : vector<8x128xf32>
    %67 = vector.extract_strided_slice %54 {offsets = [0, 256], sizes = [8, 128], strides = [1, 1]} : vector<8x512xf32> to vector<8x128xf32>
    %68 = math.tanh %67 : vector<8x128xf32>
    %69 = vector.extract_strided_slice %54 {offsets = [0, 384], sizes = [8, 128], strides = [1, 1]} : vector<8x512xf32> to vector<8x128xf32>
    %70 = arith.negf %69 : vector<8x128xf32>
    %71 = math.exp %70 : vector<8x128xf32>
    %cst_33 = arith.constant 1.000000e+00 : f32
    %72 = vector.broadcast %cst_33 : f32 to vector<8x128xf32>
    %73 = arith.addf %72, %71 : vector<8x128xf32>
    %74 = arith.divf %72, %73 : vector<8x128xf32>
    %75 = arith.mulf %66, %49 : vector<8x128xf32>
    %76 = arith.mulf %60, %68 : vector<8x128xf32>
    %77 = arith.addf %75, %76 : vector<8x128xf32>
    %78 = math.tanh %77 : vector<8x128xf32>
    %79 = arith.mulf %74, %78 : vector<8x128xf32>
    %80 = arith.select %47, %79, %48 : vector<8x128xf32>
    %81 = arith.select %47, %77, %49 : vector<8x128xf32>
    %c0_34 = arith.constant 0 : index
    %c0_35 = arith.constant 0 : index
    %82 = vector.load %arg6[%c0_34, %c0_35] : memref<8x128xf32, #tpu.memory_space<vmem>>, vector<8x128xf32>
    tpu.vector_store %arg6[%c0_34, %c0_35], %80 {strides = array<i32>} : memref<8x128xf32, #tpu.memory_space<vmem>>, vector<8x128xf32>,
    %c0_36 = arith.constant 0 : index
    %c0_37 = arith.constant 0 : index
    %83 = vector.load %arg7[%c0_36, %c0_37] : memref<8x128xf32, #tpu.memory_space<vmem>>, vector<8x128xf32>
    tpu.vector_store %arg7[%c0_36, %c0_37], %81 {strides = array<i32>} : memref<8x128xf32, #tpu.memory_space<vmem>>, vector<8x128xf32>,
    %c1_38 = arith.constant 1 : index
    %c0_39 = arith.constant 0 : index
    %c0_40 = arith.constant 0 : index
    %84 = vector.load %arg3[%c1_38, %c0_39, %c0_40] : memref<4x8x128xf32, #tpu.memory_space<vmem>>, vector<1x8x128xf32>
    %85 = vector.shape_cast %84 : vector<1x8x128xf32> to vector<8x128xf32>
    %86 = vector.shape_cast %80 : vector<8x128xf32> to vector<1x8x128xf32>
    tpu.vector_store %arg3[%c1_38, %c0_39, %c0_40], %86 {strides = array<i32>} : memref<4x8x128xf32, #tpu.memory_space<vmem>>, vector<1x8x128xf32>,
    %c4_i32_41 = arith.constant 4 : i32
    %87 = arith.muli %arg0, %c4_i32_41 : i32
    %c2_i32 = arith.constant 2 : i32
    %88 = arith.addi %87, %c2_i32 : i32
    %c6_i32_42 = arith.constant 6 : i32
    %89 = arith.cmpi slt, %88, %c6_i32_42 : i32
    %c0_43 = arith.constant 0 : index
    %c0_44 = arith.constant 0 : index
    %90 = vector.load %arg6[%c0_43, %c0_44] : memref<8x128xf32, #tpu.memory_space<vmem>>, vector<8x128xf32>
    %c0_45 = arith.constant 0 : index
    %c0_46 = arith.constant 0 : index
    %91 = vector.load %arg7[%c0_45, %c0_46] : memref<8x128xf32, #tpu.memory_space<vmem>>, vector<8x128xf32>
    %c2 = arith.constant 2 : index
    %c0_47 = arith.constant 0 : index
    %c0_48 = arith.constant 0 : index
    %92 = vector.load %arg1[%c2, %c0_47, %c0_48] : memref<4x8x512xf32, #tpu.memory_space<vmem>>, vector<1x8x512xf32>
    %93 = vector.shape_cast %92 : vector<1x8x512xf32> to vector<8x512xf32>
    %c0_49 = arith.constant 0 : index
    %c0_50 = arith.constant 0 : index
    %94 = vector.load %arg2[%c0_49, %c0_50] : memref<128x512xf32, #tpu.memory_space<vmem>>, vector<128x512xf32>
    %cst_51 = arith.constant dense<0.000000e+00> : vector<8x512xf32>
    %95 = tpu.matmul %90, %94, %cst_51 {dimension_numbers = #tpu.dot_dimension_numbers<[1], [0], [0], [1], [0, 0, 1, 1], [], []>} : vector<8x128xf32>, vector<128x512xf32>, vector<8x512xf32> -> vector<8x512xf32>
    %96 = arith.addf %93, %95 : vector<8x512xf32>
    %97 = vector.extract_strided_slice %96 {offsets = [0, 0], sizes = [8, 128], strides = [1, 1]} : vector<8x512xf32> to vector<8x128xf32>
    %98 = arith.negf %97 : vector<8x128xf32>
    %99 = math.exp %98 : vector<8x128xf32>
    %cst_52 = arith.constant 1.000000e+00 : f32
    %100 = vector.broadcast %cst_52 : f32 to vector<8x128xf32>
    %101 = arith.addf %100, %99 : vector<8x128xf32>
    %102 = arith.divf %100, %101 : vector<8x128xf32>
    %103 = vector.extract_strided_slice %96 {offsets = [0, 128], sizes = [8, 128], strides = [1, 1]} : vector<8x512xf32> to vector<8x128xf32>
    %104 = arith.negf %103 : vector<8x128xf32>
    %105 = math.exp %104 : vector<8x128xf32>
    %cst_53 = arith.constant 1.000000e+00 : f32
    %106 = vector.broadcast %cst_53 : f32 to vector<8x128xf32>
    %107 = arith.addf %106, %105 : vector<8x128xf32>
    %108 = arith.divf %106, %107 : vector<8x128xf32>
    %109 = vector.extract_strided_slice %96 {offsets = [0, 256], sizes = [8, 128], strides = [1, 1]} : vector<8x512xf32> to vector<8x128xf32>
    %110 = math.tanh %109 : vector<8x128xf32>
    %111 = vector.extract_strided_slice %96 {offsets = [0, 384], sizes = [8, 128], strides = [1, 1]} : vector<8x512xf32> to vector<8x128xf32>
    %112 = arith.negf %111 : vector<8x128xf32>
    %113 = math.exp %112 : vector<8x128xf32>
    %cst_54 = arith.constant 1.000000e+00 : f32
    %114 = vector.broadcast %cst_54 : f32 to vector<8x128xf32>
    %115 = arith.addf %114, %113 : vector<8x128xf32>
    %116 = arith.divf %114, %115 : vector<8x128xf32>
    %117 = arith.mulf %108, %91 : vector<8x128xf32>
    %118 = arith.mulf %102, %110 : vector<8x128xf32>
    %119 = arith.addf %117, %118 : vector<8x128xf32>
    %120 = math.tanh %119 : vector<8x128xf32>
    %121 = arith.mulf %116, %120 : vector<8x128xf32>
    %122 = arith.select %89, %121, %90 : vector<8x128xf32>
    %123 = arith.select %89, %119, %91 : vector<8x128xf32>
    %c0_55 = arith.constant 0 : index
    %c0_56 = arith.constant 0 : index
    %124 = vector.load %arg6[%c0_55, %c0_56] : memref<8x128xf32, #tpu.memory_space<vmem>>, vector<8x128xf32>
    tpu.vector_store %arg6[%c0_55, %c0_56], %122 {strides = array<i32>} : memref<8x128xf32, #tpu.memory_space<vmem>>, vector<8x128xf32>,
    %c0_57 = arith.constant 0 : index
    %c0_58 = arith.constant 0 : index
    %125 = vector.load %arg7[%c0_57, %c0_58] : memref<8x128xf32, #tpu.memory_space<vmem>>, vector<8x128xf32>
    tpu.vector_store %arg7[%c0_57, %c0_58], %123 {strides = array<i32>} : memref<8x128xf32, #tpu.memory_space<vmem>>, vector<8x128xf32>,
    %c2_59 = arith.constant 2 : index
    %c0_60 = arith.constant 0 : index
    %c0_61 = arith.constant 0 : index
    %126 = vector.load %arg3[%c2_59, %c0_60, %c0_61] : memref<4x8x128xf32, #tpu.memory_space<vmem>>, vector<1x8x128xf32>
    %127 = vector.shape_cast %126 : vector<1x8x128xf32> to vector<8x128xf32>
    %128 = vector.shape_cast %122 : vector<8x128xf32> to vector<1x8x128xf32>
    tpu.vector_store %arg3[%c2_59, %c0_60, %c0_61], %128 {strides = array<i32>} : memref<4x8x128xf32, #tpu.memory_space<vmem>>, vector<1x8x128xf32>,
    %c4_i32_62 = arith.constant 4 : i32
    %129 = arith.muli %arg0, %c4_i32_62 : i32
    %c3_i32 = arith.constant 3 : i32
    %130 = arith.addi %129, %c3_i32 : i32
    %c6_i32_63 = arith.constant 6 : i32
    %131 = arith.cmpi slt, %130, %c6_i32_63 : i32
    %c0_64 = arith.constant 0 : index
    %c0_65 = arith.constant 0 : index
    %132 = vector.load %arg6[%c0_64, %c0_65] : memref<8x128xf32, #tpu.memory_space<vmem>>, vector<8x128xf32>
    %c0_66 = arith.constant 0 : index
    %c0_67 = arith.constant 0 : index
    %133 = vector.load %arg7[%c0_66, %c0_67] : memref<8x128xf32, #tpu.memory_space<vmem>>, vector<8x128xf32>
    %c3 = arith.constant 3 : index
    %c0_68 = arith.constant 0 : index
    %c0_69 = arith.constant 0 : index
    %134 = vector.load %arg1[%c3, %c0_68, %c0_69] : memref<4x8x512xf32, #tpu.memory_space<vmem>>, vector<1x8x512xf32>
    %135 = vector.shape_cast %134 : vector<1x8x512xf32> to vector<8x512xf32>
    %c0_70 = arith.constant 0 : index
    %c0_71 = arith.constant 0 : index
    %136 = vector.load %arg2[%c0_70, %c0_71] : memref<128x512xf32, #tpu.memory_space<vmem>>, vector<128x512xf32>
    %cst_72 = arith.constant dense<0.000000e+00> : vector<8x512xf32>
    %137 = tpu.matmul %132, %136, %cst_72 {dimension_numbers = #tpu.dot_dimension_numbers<[1], [0], [0], [1], [0, 0, 1, 1], [], []>} : vector<8x128xf32>, vector<128x512xf32>, vector<8x512xf32> -> vector<8x512xf32>
    %138 = arith.addf %135, %137 : vector<8x512xf32>
    %139 = vector.extract_strided_slice %138 {offsets = [0, 0], sizes = [8, 128], strides = [1, 1]} : vector<8x512xf32> to vector<8x128xf32>
    %140 = arith.negf %139 : vector<8x128xf32>
    %141 = math.exp %140 : vector<8x128xf32>
    %cst_73 = arith.constant 1.000000e+00 : f32
    %142 = vector.broadcast %cst_73 : f32 to vector<8x128xf32>
    %143 = arith.addf %142, %141 : vector<8x128xf32>
    %144 = arith.divf %142, %143 : vector<8x128xf32>
    %145 = vector.extract_strided_slice %138 {offsets = [0, 128], sizes = [8, 128], strides = [1, 1]} : vector<8x512xf32> to vector<8x128xf32>
    %146 = arith.negf %145 : vector<8x128xf32>
    %147 = math.exp %146 : vector<8x128xf32>
    %cst_74 = arith.constant 1.000000e+00 : f32
    %148 = vector.broadcast %cst_74 : f32 to vector<8x128xf32>
    %149 = arith.addf %148, %147 : vector<8x128xf32>
    %150 = arith.divf %148, %149 : vector<8x128xf32>
    %151 = vector.extract_strided_slice %138 {offsets = [0, 256], sizes = [8, 128], strides = [1, 1]} : vector<8x512xf32> to vector<8x128xf32>
    %152 = math.tanh %151 : vector<8x128xf32>
    %153 = vector.extract_strided_slice %138 {offsets = [0, 384], sizes = [8, 128], strides = [1, 1]} : vector<8x512xf32> to vector<8x128xf32>
    %154 = arith.negf %153 : vector<8x128xf32>
    %155 = math.exp %154 : vector<8x128xf32>
    %cst_75 = arith.constant 1.000000e+00 : f32
    %156 = vector.broadcast %cst_75 : f32 to vector<8x128xf32>
    %157 = arith.addf %156, %155 : vector<8x128xf32>
    %158 = arith.divf %156, %157 : vector<8x128xf32>
    %159 = arith.mulf %150, %133 : vector<8x128xf32>
    %160 = arith.mulf %144, %152 : vector<8x128xf32>
    %161 = arith.addf %159, %160 : vector<8x128xf32>
    %162 = math.tanh %161 : vector<8x128xf32>
    %163 = arith.mulf %158, %162 : vector<8x128xf32>
    %164 = arith.select %131, %163, %132 : vector<8x128xf32>
    %165 = arith.select %131, %161, %133 : vector<8x128xf32>
    %c0_76 = arith.constant 0 : index
    %c0_77 = arith.constant 0 : index
    %166 = vector.load %arg6[%c0_76, %c0_77] : memref<8x128xf32, #tpu.memory_space<vmem>>, vector<8x128xf32>
    tpu.vector_store %arg6[%c0_76, %c0_77], %164 {strides = array<i32>} : memref<8x128xf32, #tpu.memory_space<vmem>>, vector<8x128xf32>,
    %c0_78 = arith.constant 0 : index
    %c0_79 = arith.constant 0 : index
    %167 = vector.load %arg7[%c0_78, %c0_79] : memref<8x128xf32, #tpu.memory_space<vmem>>, vector<8x128xf32>
    tpu.vector_store %arg7[%c0_78, %c0_79], %165 {strides = array<i32>} : memref<8x128xf32, #tpu.memory_space<vmem>>, vector<8x128xf32>,
    %c3_80 = arith.constant 3 : index
    %c0_81 = arith.constant 0 : index
    %c0_82 = arith.constant 0 : index
    %168 = vector.load %arg3[%c3_80, %c0_81, %c0_82] : memref<4x8x128xf32, #tpu.memory_space<vmem>>, vector<1x8x128xf32>
    %169 = vector.shape_cast %168 : vector<1x8x128xf32> to vector<8x128xf32>
    %170 = vector.shape_cast %164 : vector<8x128xf32> to vector<1x8x128xf32>
    tpu.vector_store %arg3[%c3_80, %c0_81, %c0_82], %170 {strides = array<i32>} : memref<4x8x128xf32, #tpu.memory_space<vmem>>, vector<1x8x128xf32>,
    %c1_i32_83 = arith.constant 1 : i32
    %171 = arith.cmpi eq, %arg0, %c1_i32_83 : i32
    %172 = arith.extui %171 : i1 to i32
    %c0_i32_84 = arith.constant 0 : i32
    %173 = arith.cmpi ne, %172, %c0_i32_84 : i32
    scf.if %173 {
      %c0_85 = arith.constant 0 : index
      %c0_86 = arith.constant 0 : index
      %174 = vector.load %arg6[%c0_85, %c0_86] : memref<8x128xf32, #tpu.memory_space<vmem>>, vector<8x128xf32>
      %c0_87 = arith.constant 0 : index
      %c0_88 = arith.constant 0 : index
      %175 = vector.load %arg4[%c0_87, %c0_88] : memref<8x128xf32, #tpu.memory_space<vmem>>, vector<8x128xf32>
      tpu.vector_store %arg4[%c0_87, %c0_88], %174 {strides = array<i32>} : memref<8x128xf32, #tpu.memory_space<vmem>>, vector<8x128xf32>,
      %c0_89 = arith.constant 0 : index
      %c0_90 = arith.constant 0 : index
      %176 = vector.load %arg7[%c0_89, %c0_90] : memref<8x128xf32, #tpu.memory_space<vmem>>, vector<8x128xf32>
      %c0_91 = arith.constant 0 : index
      %c0_92 = arith.constant 0 : index
      %177 = vector.load %arg5[%c0_91, %c0_92] : memref<8x128xf32, #tpu.memory_space<vmem>>, vector<8x128xf32>
      tpu.vector_store %arg5[%c0_91, %c0_92], %176 {strides = array<i32>} : memref<8x128xf32, #tpu.memory_space<vmem>>, vector<8x128xf32>,
    } else {
    }
    return
  }
  func.func @transform_0(%arg0: i32) -> (i32, i32, i32) {
    %c0_i32 = arith.constant 0 : i32
    %c0_i32_0 = arith.constant 0 : i32
    %c0_i32_1 = arith.constant 0 : i32
    return %arg0, %c0_i32, %c0_i32_0 : i32, i32, i32
  }
  func.func @transform_1(%arg0: i32) -> (i32, i32) {
    %c0_i32 = arith.constant 0 : i32
    %c0_i32_0 = arith.constant 0 : i32
    %c0_i32_1 = arith.constant 0 : i32
    return %c0_i32, %c0_i32_0 : i32, i32
  }
  func.func @transform_2(%arg0: i32) -> (i32, i32, i32) {
    %c0_i32 = arith.constant 0 : i32
    %c0_i32_0 = arith.constant 0 : i32
    %c0_i32_1 = arith.constant 0 : i32
    return %arg0, %c0_i32, %c0_i32_0 : i32, i32, i32
  }
  func.func @transform_3(%arg0: i32) -> (i32, i32) {
    %c0_i32 = arith.constant 0 : i32
    %c0_i32_0 = arith.constant 0 : i32
    %c0_i32_1 = arith.constant 0 : i32
    return %c0_i32, %c0_i32_0 : i32, i32
  }
  func.func @transform_4(%arg0: i32) -> (i32, i32) {
    %c0_i32 = arith.constant 0 : i32
    %c0_i32_0 = arith.constant 0 : i32
    %c0_i32_1 = arith.constant 0 : i32
    return %c0_i32, %c0_i32_0 : i32, i32
  }
}

</mosaic_0001>

<bundles_post_ra>
// kernel: tpu_custom_call.1
= control target key start
LH: loop header
LB: loop body
LE: loop exit
PB: predicated region body
PF: predicated region fallthrough
CT: control target
= control target key end

     0   :  { %10 = vsyncpa [#allocation5], 0  ;;  %s2554_s0 = inlined_call_operand.hbm [shape: f32[8,8,512], index: 0, kind: input, shape index: {}]   ;;  %s2555_s1 = inlined_call_operand.hbm [shape: f32[128,512], index: 1, kind: input, shape index: {}]   ;;  %s2556_s2 = inlined_call_operand.hbm [shape: f32[8,8,128], index: 2, kind: output, shape index: {0}]   ;;  %s2557_s3 = inlined_call_operand.hbm [shape: f32[8,128], index: 3, kind: output, shape index: {1}]   ;;  %s2558_s4 = inlined_call_operand.hbm [shape: f32[8,128], index: 4, kind: output, shape index: {2}]  }
   0x1   :  { %12 = vsyncpa [#allocation5 + $0x1], 0 }
   0x2   :  { %13 = vsyncpa [#allocation8], 0 }
   0x3   :  { %14 = vsyncpa [#allocation6], 0 }
   0x4   :  { %16 = vsyncpa [#allocation6 + $0x1], 0 }
   0x5   :  { %17 = vsyncpa [#allocation11], 0  ;;  %s2063_s15 = smov 0   ;;  %s2065_s16 = smov 0  }
   0x6   :  { %s2067_s17 = smov 0   ;;  %s2069_s18 = smov 0  }
   0x7 LB: > { %s2084_s19 = sadd.s32 4294967295, %s2025_s18   ;;  %s1390_s20 = sadd.s32 4294967294, %s2025_s18   ;;  %s2025_s18 = sphi %s2069_s18, %s2586_s18   ;;  %s2021_s17 = sphi %s2067_s17, %s2585_s17   ;;  %s2017_s16 = sphi %s2065_s16, %s2584_s16   ;;  %s2013_s15 = sphi %s2063_s15, %s2583_s15  }
   0x8   : > { %p43_p0 = scmp.ne.s32.totalorder %s2017_s16, %s2013_s15  ;;  %p2559_p1 = scmp.eq.s32.totalorder %s2084_s19, 0 }
   0x9   : > { %p94_p3 = scmp.eq.s32.totalorder %s1390_s20, 1  ;;  %p1391_p5 = scmp.ge.s32.totalorder %s2025_s18, 1 }
   0xa   : > { %p2093_p4 = por %p2559_p1, %p43_p0  ;;  %p143_p7 = scmp.lt.s32.totalorder %s2025_s18, 3 }
   0xb   : > { %p2098_p6 = por %p94_p3, %p43_p0  ;;  %s2027_s24 = smov [#allocation7]  }
   0xc   : > { %s2562_s21 = scalar_select %p2093_p4, 1, 0 }
   0xd   : > { %s2563_s22 = scalar_select %p2098_p6, 1, 0 }
   0xe   : > { %p2104_p9 = pnand %p1391_p5, %p143_p7  ;;  %s155_s25 = sshll.u32 %s2027_s24, 4  ;;  %s2108_s25 = int_to_ptr.vmem [resolvable:$true] %s155_s25 }
   0xf   : > { %s2120_s27 = sadd.s32 1, %s2025_s18   ;;  %s30_s28 = sadd.s32 1, %s2021_s17 }
  0x10   : > { %s2564_s23 = scalar_select %p2104_p9, 1, 0 }
  0x11   : > { %p1716_p10 = pneg %p2104_p9  ;;  %s27_s29 = ssub.s32 %s2025_s18, %s2120_s27 }
  0x12   : > { %s1841_s6 = scalar_lea.hbm %s2555_s1, 8192 }
  0x13   : > { %p2115_p12 = pnand %p1716_p10, %p2559_p1  ;;  %p1842_p13 = scmp.ne.s32.totalorder %s2555_s1, %s1841_s6 }
  0x14   : > { %p1848_p7 = scmp.lt.u32.totalorder %s1841_s6, %s2555_s1 }
  0x15   : > { %p1843_p0 = pneg %p2115_p12 }
  0x17   : > { %p1844_p3 = pnand %p1843_p0, %p1842_p13 }
  0x19   : > { %p1845_p5 = pneg %p1844_p3 }
  0x1b   : > { %p1850_p10 = pnand %p1848_p7, %p1845_p5 }
  0x1d   : > { %1853 = shalt.err (!%p1850_p10)
}
  0x1e   : > { %s1854_s11 = scalar_lea.vmem %s2108_s25, 8192  ;;  %p1862_p2 = scmp.lt.s32.totalorder %s2108_s25, %s2108_s25 }
  0x1f   : > { %p1855_p11 = scmp.ne.s32.totalorder %s2108_s25, %s1854_s11  ;;  %p1863_p6 = scmp.lt.s32.totalorder %s1854_s11, %s1854_s11 }
  0x21   : > { %p1857_p8 = pnand %p1855_p11, %p1843_p0  ;;  %p1864_p4 = por %p1863_p6, %p1862_p2 }
  0x23   : > { %p1858_p1 = pneg %p1857_p8 }
  0x25   : > { %p1865_p9 = pnand %p1864_p4, %p1858_p1 }
  0x27   : > { %1868 = shalt.err (!%p1865_p9)
}
  0x28   : > { %s2028_s12 = smov 512   ;;  %s2029_s13 = smov 32  }
  0x29   : > { %1719 = dma.hbm_to_vmem [thread:$0]  (!%p2115_p12), %s2555_s1, 8192, %s2108_s25, [#allocation8], %s2028_s12, %s2028_s12, %s2029_s13  }
  0x2a   : > { %p28_p1 = scmp.eq.s32.totalorder %s27_s29, 0  ;;  %p37_p2 = scmp.ne.s32.totalorder %s2021_s17, %s2017_s16 }
  0x2b   : > { %p38_p4 = scmp.eq.s32.totalorder %s2025_s18, 0  ;;  %p1729_p6 = scmp.lt.s32.totalorder %s2025_s18, 2 }
  0x2c   : > { %s2154_s24 = scalar_select %p28_p1, %s2021_s17, %s30_s28  }
  0x2d   : > { %p39_p8 = por %p38_p4, %p37_p2  ;;  %p2566_p9 = scmp.eq.s32.totalorder %s2084_s19, 1 }
  0x2e   : > { %s169_s26 = sand.u32 1, %s2021_s17   ;;  %s1442_s5 = sshll.u32 %s2025_s18, 11 }
  0x2f   : > { %p2158_p11 = por %p2566_p9, %p37_p2  ;;  %s1394_s6 = sshll.u32 %s169_s26, 7 }
  0x30   : > { %s2167_s9 = scalar_lea.hbm %s2554_s0, %s1442_s5  ;;  %s173_s25 = scalar_lea.vmem [#allocation4], %s1394_s6 }
  0x31   : > { %s181_s28 = sshll.u32 %s173_s25, 4  ;;  %p2169_p12 = pnand %p1729_p6, %p39_p8  ;;  %s2173_s28 = int_to_ptr.vmem [resolvable:$true] %s181_s28 }
  0x32   : > { %s2175_s10 = scalar_lea.sflag [#allocation5], %s169_s26  ;;  %s1869_s11 = scalar_lea.hbm %s2167_s9, 2048 }
  0x33   : > { %p1870_p13 = scmp.ne.s32.totalorder %s2167_s9, %s1869_s11  ;;  %p1871_p0 = pneg %p2169_p12 }
  0x34   : > { %s1874_s5 = scalar_lea.hbm %s2554_s0, 4096  ;;  %p1875_p7 = scmp.lt.u32.totalorder %s2167_s9, %s2554_s0 }
  0x35   : > { %p1872_p3 = pnand %p1871_p0, %p1870_p13  ;;  %p1876_p10 = scmp.lt.u32.totalorder %s1874_s5, %s1869_s11 }
  0x36   : > { %p1878_p2 = scmp.lt.u32.totalorder %s1869_s11, %s2167_s9 }
  0x37   : > { %p1873_p5 = pneg %p1872_p3  ;;  %p1877_p1 = por %p1876_p10, %p1875_p7 }
  0x39   : > { %p1879_p4 = por %p1878_p2, %p1877_p1 }
  0x3b   : > { %p1880_p6 = pnand %p1879_p4, %p1873_p5 }
  0x3d   : > { %1883 = shalt.err (!%p1880_p6)
}
  0x3e   : > { %s1884_s26 = scalar_lea.vmem %s2173_s28, 2048  ;;  %s2030_s8 = smov [#allocation4]  }
  0x3f   : > { %p1885_p8 = scmp.ne.s32.totalorder %s2173_s28, %s1884_s26  ;;  %s1889_s25 = sshll.u32 %s2030_s8, 4  ;;  %s1890_s25 = int_to_ptr.vmem [resolvable:$false] %s1889_s25 }
  0x40   : > { %s1891_s14 = scalar_lea.vmem %s1890_s25, 4096  ;;  %p1892_p3 = scmp.lt.s32.totalorder %s2173_s28, %s1890_s25 }
  0x41   : > { %p1887_p9 = pnand %p1885_p8, %p1871_p0  ;;  %p1893_p7 = scmp.lt.s32.totalorder %s1891_s14, %s1884_s26 }
  0x43   : > { %p1888_p13 = pneg %p1887_p9  ;;  %p1894_p10 = por %p1893_p7, %p1892_p3 }
  0x45   : > { %p1895_p1 = pnand %p1894_p10, %p1888_p13 }
  0x47   : > { %1898 = shalt.err (!%p1895_p1)
}
  0x48   : > { %1723 = dma.hbm_to_vmem [thread:$0]  (!%p2169_p12), %s2167_s9, 2048, %s2173_s28, %s2175_s10, %s2028_s12, %s2028_s12, %s2029_s13  }
  0x49   : > { %p2569_p0 = scmp.ne.s32.totalorder %s2564_s23, 0 }
  0x4a   : > { %s2209_s11 = sand.u32 (!%p2569_p0), 1, %s2017_s16   ;;  %p2570_p5 = scmp.ne.s32.totalorder (!%p2569_p0), %s2562_s21, 0 }
  0x4b   : > { %193 = sbr.rel (%p2569_p0) target bundleno = 1252 (0x4e4), region = 28  ;;  %s1399_s20 = sshll.u32 (!%p2569_p0), %s2209_s11, 7 }
  0x4c   : > { %s196_s5 = scalar_lea.sflag (!%p2569_p0), [#allocation5], %s2209_s11  ;;  %s2213_s6 = scalar_lea.vmem (!%p2569_p0), [#allocation4], %s1399_s20 }
  0x52   : > { %1996 = dma.done.wait (%p2570_p5), %s196_s5, 2048  }
  0x53   : > { %1998 = vsyncadd (%p2570_p5), %s196_s5, 4294965248  ;;  %p2571_p12 = scmp.eq.s32.totalorder %s2084_s19, 0 }
  0x55   : > { %2000 = dma.done.wait (%p2571_p12), [#allocation8], 8192   ;;  %p2572_p2 = pmov %p2571_p12 }
  0x56   : > { %s1401_s23 = sshll.u32 %s2209_s11, 5  ;;  %p2573_p4 = scmp.ne.s32.totalorder %s2084_s19, 0 }
  0x57   : > { %2002 = vsyncadd (%p2572_p2), [#allocation8], 4294959104  ;;  %s2224_s12 = scalar_lea.vmem [#allocation9], %s1401_s23  ;;  %v2031_v0 = vmov (!%p2573_p4), 0.0  }
  0x58   : > { %233 = sbr.rel (%p2573_p4) target bundleno = 95 (0x5f), region = 40  ;;  %234 = vst [vmem:[#allocation2] sm:$0xff] (!%p2573_p4), %v2031_v0  ;;  %235 = vst [vmem:[#allocation3] sm:$0xff] (!%p2573_p4), %v2031_v0 }
  0x5f PF: > { %v245_v1 = vld [vmem:[#allocation7 + $0x8] sm:$0xff]  ;;  %v244_v3 = vld [vmem:[#allocation7] sm:$0xff]  ;;  %v2032_v8 = vmov 0.0   ;;  %v247_v20 = vld [vmem:[#allocation7 + $0x18] sm:$0xff]  ;;  %s2371_s21 = sshll.u32 %s2084_s19, 2  ;;  %p1431_p3 = scmp.ne.s32.totalorder %s2084_s19, 1 }
  0x60   : > { %v249_v2 = vld [vmem:[#allocation7 + $0x28] sm:$0xff]  ;;  %v248_v5 = vld [vmem:[#allocation7 + $0x20] sm:$0xff]  ;;  %372 = vmatprep.mubr.f32.mxu0 %v2032_v8  ;;  %443 = vmatprep.mubr.f32.mxu1 %v2032_v8  ;;  %v251_v21 = vld [vmem:[#allocation7 + $0x38] sm:$0xff]  ;;  %p237_p6 = scmp.lt.s32.totalorder %s2371_s21, 6  ;;  %s486_s9 = sadd.s32 1, %s2371_s21 }
  0x61   : > { %v2228_v4 = vpack.c.bf16 %v249_v2, %v245_v1  ;;  %v253_v6 = vld [vmem:[#allocation7 + $0x48] sm:$0xff]  ;;  %v2232_v9 = vpack.c.bf16 %v248_v5, %v244_v3  ;;  %v252_v11 = vld [vmem:[#allocation7 + $0x40] sm:$0xff]  ;;  %v2243_v23 = vpack.c.bf16 %v251_v21, %v247_v20  ;;  %v246_v24 = vld [vmem:[#allocation7 + $0x10] sm:$0xff]  ;;  %p487_p8 = scmp.lt.s32.totalorder %s486_s9, 6  ;;  %s738_s29 = sadd.s32 2, %s2371_s21 }
  0x62   : > { %v257_v7 = vld [vmem:[#allocation7 + $0x68] sm:$0xff]  ;;  %v256_v12 = vld [vmem:[#allocation7 + $0x60] sm:$0xff]  ;;  %v250_v25 = vld [vmem:[#allocation7 + $0x30] sm:$0xff]  ;;  %s478_s13 = scalar_select %p237_p6, 1, 0 }
  0x63   : > { %v2234_v10 = vpack.c.bf16 %v257_v7, %v253_v6  ;;  %v261_v13 = vld [vmem:[#allocation7 + $0x88] sm:$0xff]  ;;  %1445 = vmatprep.subr.bf16.mxu0 %v2228_v4  ;;  %v2238_v15 = vpack.c.bf16 %v256_v12, %v252_v11  ;;  %v260_v16 = vld [vmem:[#allocation7 + $0x80] sm:$0xff]  ;;  %v2245_v26 = vpack.c.bf16 %v250_v25, %v246_v24  ;;  %1477 = vmatprep.subr.bf16.mxu1 %v2243_v23  ;;  %v255_v28 = vld [vmem:[#allocation7 + $0x58] sm:$0xff]  ;;  %s729_s28 = scalar_select %p487_p8, 1, 0 }
  0x64   : > { %v265_v14 = vld [vmem:[#allocation7 + $0xa8] sm:$0xff]  ;;  %1447 = vmatpush1.bf16.msra.mxu0 %v2232_v9  ;;  %v264_v17 = vld [vmem:[#allocation7 + $0xa0] sm:$0xff]  ;;  %v259_v29 = vld [vmem:[#allocation7 + $0x78] sm:$0xff]  ;;  %p739_p9 = scmp.lt.s32.totalorder %s738_s29, 6  ;;  %s990_s7 = sadd.s32 3, %s2371_s21 }
  0x65   : > { %1449 = vmatprep.subr.bf16.mxu0 %v2234_v10  ;;  %v2241_v18 = vpack.c.bf16 %v265_v14, %v261_v13  ;;  %v269_v19 = vld [vmem:[#allocation7 + $0xc8] sm:$0xff]  ;;  %v2248_v27 = vpack.c.bf16 %v264_v17, %v260_v16  ;;  %v254_v30 = vld [vmem:[#allocation7 + $0x50] sm:$0xff]  ;;  %v268_v32 = vld [vmem:[#allocation7 + $0xc0] sm:$0xff]  ;;  %1479 = vmatpush1.bf16.msra.mxu1 %v2245_v26  ;;  %v2255_v34 = vpack.c.bf16 %v259_v29, %v255_v28  ;;  %p991_p13 = scmp.lt.s32.totalorder %s990_s7, 6 }
  0x66   : > { %v273_v22 = vld [vmem:[#allocation7 + $0xe8] sm:$0xff]  ;;  %v272_v33 = vld [vmem:[#allocation7 + $0xe0] sm:$0xff]  ;;  %v258_v35 = vld [vmem:[#allocation7 + $0x70] sm:$0xff]  ;;  %s981_s10 = scalar_select %p739_p9, 1, 0 }
  0x67   : > { %v2252_v31 = vpack.c.bf16 %v273_v22, %v269_v19  ;;  %v277_v36 = vld [vmem:[#allocation7 + $0x108] sm:$0xff]  ;;  %v2257_v38 = vpack.c.bf16 %v258_v35, %v254_v30  ;;  %v263_v39 = vld [vmem:[#allocation7 + $0x98] sm:$0xff]  ;;  %1481 = vmatprep.subr.bf16.mxu1 %v2255_v34  ;;  %v262_v41 = vld [vmem:[#allocation7 + $0x90] sm:$0xff]  ;;  %v2261_v43 = vpack.c.bf16 %v272_v33, %v268_v32  ;;  %s1233_s26 = scalar_select %p991_p13, 1, 0 }
  0x68   : > { %1451 = vmatpush1.bf16.msra.mxu0 %v2238_v15  ;;  %v281_v37 = vld [vmem:[#allocation7 + $0x128] sm:$0xff]  ;;  %v267_v40 = vld [vmem:[#allocation7 + $0xb8] sm:$0xff]  ;;  %v266_v42 = vld [vmem:[#allocation7 + $0xb0] sm:$0xff] }
  0x69   : > { %1453 = vmatprep.subr.bf16.mxu0 %v2241_v18  ;;  %v276_v44 = vld [vmem:[#allocation7 + $0x100] sm:$0xff]  ;;  %v2263_v46 = vpack.c.bf16 %v267_v40, %v263_v39  ;;  %v2266_v47 = vpack.c.bf16 %v281_v37, %v277_v36  ;;  %1483 = vmatpush1.bf16.msra.mxu1 %v2257_v38  ;;  %v285_v48 = vld [vmem:[#allocation7 + $0x148] sm:$0xff]  ;;  %v2269_v49 = vpack.c.bf16 %v266_v42, %v262_v41  ;;  %v271_v50 = vld [vmem:[#allocation7 + $0xd8] sm:$0xff] }
  0x6a   : > { %v280_v45 = vld [vmem:[#allocation7 + $0x120] sm:$0xff]  ;;  %v275_v51 = vld [vmem:[#allocation7 + $0xf8] sm:$0xff]  ;;  %v289_v52 = vld [vmem:[#allocation7 + $0x168] sm:$0xff] }
  0x6b   : > { %1485 = vmatprep.subr.bf16.mxu1 %v2263_v46  ;;  %v2272_v53 = vpack.c.bf16 %v275_v51, %v271_v50  ;;  %v270_v54 = vld [vmem:[#allocation7 + $0xd0] sm:$0xff]  ;;  %v2275_v56 = vpack.c.bf16 %v280_v45, %v276_v44  ;;  %v279_v57 = vld [vmem:[#allocation7 + $0x118] sm:$0xff]  ;;  %v2278_v59 = vpack.c.bf16 %v289_v52, %v285_v48  ;;  %v284_v60 = vld [vmem:[#allocation7 + $0x140] sm:$0xff] }
  0x6c   : > { %1455 = vmatpush1.bf16.msra.mxu0 %v2248_v27  ;;  %v274_v55 = vld [vmem:[#allocation7 + $0xf0] sm:$0xff]  ;;  %v283_v58 = vld [vmem:[#allocation7 + $0x138] sm:$0xff]  ;;  %v288_v61 = vld [vmem:[#allocation7 + $0x160] sm:$0xff] }
  0x6d   : > { %1457 = vmatprep.subr.bf16.mxu0 %v2252_v31  ;;  %1487 = vmatpush1.bf16.msra.mxu1 %v2269_v49  ;;  %v293_v62 = vld [vmem:[#allocation7 + $0x188] sm:$0xff]  ;;  %v2281_v63 = vpack.c.bf16 %v274_v55, %v270_v54  ;;  %v2284_v1 = vpack.c.bf16 %v283_v58, %v279_v57  ;;  %v278_v2 = vld [vmem:[#allocation7 + $0x110] sm:$0xff]  ;;  %v287_v5 = vld [vmem:[#allocation7 + $0x158] sm:$0xff]  ;;  %v2287_v7 = vpack.c.bf16 %v288_v61, %v284_v60 }
  0x6e   : > { %v297_v0 = vld [vmem:[#allocation7 + $0x1a8] sm:$0xff]  ;;  %1489 = vmatprep.subr.bf16.mxu1 %v2272_v53  ;;  %v282_v3 = vld [vmem:[#allocation7 + $0x130] sm:$0xff]  ;;  %v291_v6 = vld [vmem:[#allocation7 + $0x178] sm:$0xff] }
  0x6f   : > { %v2290_v11 = vpack.c.bf16 %v297_v0, %v293_v62  ;;  %v292_v12 = vld [vmem:[#allocation7 + $0x180] sm:$0xff]  ;;  %v301_v14 = vld [vmem:[#allocation7 + $0x1c8] sm:$0xff]  ;;  %v2293_v16 = vpack.c.bf16 %v282_v3, %v278_v2  ;;  %v2296_v19 = vpack.c.bf16 %v291_v6, %v287_v5  ;;  %v286_v20 = vld [vmem:[#allocation7 + $0x150] sm:$0xff] }
  0x70   : > { %1459 = vmatpush1.bf16.msra.mxu0 %v2261_v43  ;;  %v296_v13 = vld [vmem:[#allocation7 + $0x1a0] sm:$0xff]  ;;  %v305_v17 = vld [vmem:[#allocation7 + $0x1e8] sm:$0xff]  ;;  %v290_v21 = vld [vmem:[#allocation7 + $0x170] sm:$0xff] }
  0x71   : > { %1461 = vmatprep.subr.bf16.mxu0 %v2266_v47  ;;  %1491 = vmatpush1.bf16.msra.mxu1 %v2281_v63  ;;  %v295_v22 = vld [vmem:[#allocation7 + $0x198] sm:$0xff]  ;;  %v2299_v25 = vpack.c.bf16 %v296_v13, %v292_v12  ;;  %v2302_v28 = vpack.c.bf16 %v305_v17, %v301_v14  ;;  %v300_v29 = vld [vmem:[#allocation7 + $0x1c0] sm:$0xff]  ;;  %v2305_v32 = vpack.c.bf16 %v290_v21, %v286_v20  ;;  %v294_v35 = vld [vmem:[#allocation7 + $0x190] sm:$0xff] }
  0x72   : > { %1493 = vmatprep.subr.bf16.mxu1 %v2284_v1  ;;  %v299_v24 = vld [vmem:[#allocation7 + $0x1b8] sm:$0xff]  ;;  %v304_v30 = vld [vmem:[#allocation7 + $0x1e0] sm:$0xff]  ;;  %v298_v36 = vld [vmem:[#allocation7 + $0x1b0] sm:$0xff] }
  0x73   : > { %v2308_v33 = vpack.c.bf16 %v299_v24, %v295_v22  ;;  %v303_v37 = vld [vmem:[#allocation7 + $0x1d8] sm:$0xff]  ;;  %v2311_v40 = vpack.c.bf16 %v304_v30, %v300_v29  ;;  %v2315_v41 = vpack.c.bf16 %v298_v36, %v294_v35  ;;  %v302_v44 = vld [vmem:[#allocation7 + $0x1d0] sm:$0xff]  ;;  %v240_v51 = vld [vmem:[%s2213_s6] sm:$0xff]  ;;  %v479_v29 = vstv %s478_s13 }
  0x74   : > { %1463 = vmatpush1.bf16.msra.mxu0 %v2275_v56  ;;  %v307_v39 = vld [vmem:[#allocation7 + $0x1f8] sm:$0xff]  ;;  %v306_v45 = vld [vmem:[#allocation7 + $0x1f0] sm:$0xff]  ;;  %v241_v52 = vld [vmem:[%s2213_s6 + $0x8] sm:$0xff]  ;;  %vm480_vm0 = vcmp.eq.s32.totalorder %v479_v29, 1 }
  0x75   : > { %1465 = vmatprep.subr.bf16.mxu0 %v2278_v59  ;;  %1495 = vmatpush1.bf16.msra.mxu1 %v2293_v16  ;;  %v2318_v42 = vpack.c.bf16 %v307_v39, %v303_v37  ;;  %v2321_v48 = vld [vmem:[#allocation2] sm:$0xff]  ;;  %v2324_v50 = vpack.c.bf16 %v306_v45, %v302_v44  ;;  %v243_v62 = vld [vmem:[%s2213_s6 + $0x18] sm:$0xff] }
  0x76   : > { %1497 = vmatprep.subr.bf16.mxu1 %v2296_v19  ;;  %v242_v3 = vld [vmem:[%s2213_s6 + $0x10] sm:$0xff]  ;;  %v239_v22 = vld [vmem:[#allocation3] sm:$0xff] }
  0x78   : > { %1467 = vmatpush1.bf16.msra.mxu0 %v2287_v7 }
  0x79   : > { %1469 = vmatprep.subr.bf16.mxu0 %v2290_v11  ;;  %1499 = vmatpush1.bf16.msra.mxu1 %v2305_v32 }
  0x7a   : > { %1501 = vmatprep.subr.bf16.mxu1 %v2308_v33 }
  0x7c   : > { %1471 = vmatpush1.bf16.msra.mxu0 %v2299_v25 }
  0x7d   : > { %1473 = vmatprep.subr.bf16.mxu0 %v2302_v28  ;;  %1503 = vmatpush1.bf16.msra.mxu1 %v2315_v41 }
  0x7e   : > { %1505 = vmatprep.subr.bf16.mxu1 %v2318_v42 }
  0x80   : > { %1475 = vmatpush1.bf16.msra.mxu0 %v2311_v40 }
  0x81   : > { %1509 = vmatprep.subr.bf16.mxu0 %v2228_v4  ;;  %1507 = vmatpush1.bf16.msra.mxu1 %v2324_v50 }
  0x82   : > { %1541 = vmatprep.subr.bf16.mxu1 %v2243_v23 }
  0x83   : > { %373 = vmatmul.mubr.f32.vlgmr.msra.gmra.mrb[0].mxu0 %v2321_v48 }
  0x84   : > { %1511 = vmatpush1.bf16.msra.mxu0 %v2232_v9  ;;  %623 = vmatprep.mubr.f32.mxu0 %v2032_v8 }
  0x85   : > { %1513 = vmatprep.subr.bf16.mxu0 %v2234_v10  ;;  %444 = vmatmul.mubr.f32.vlgmr.msra.gmra.mrb[0].mxu1 %v2321_v48 }
  0x86   : > { %1543 = vmatpush1.bf16.msra.mxu1 %v2245_v26  ;;  %694 = vmatprep.mubr.f32.mxu1 %v2032_v8 }
  0x87   : > { %1545 = vmatprep.subr.bf16.mxu1 %v2255_v34 }
  0x88   : > { %1515 = vmatpush1.bf16.msra.mxu0 %v2238_v15 }
  0x89   : > { %1517 = vmatprep.subr.bf16.mxu0 %v2241_v18 }
  0x8a   : > { %1547 = vmatpush1.bf16.msra.mxu1 %v2257_v38 }
  0x8b   : > { %1549 = vmatprep.subr.bf16.mxu1 %v2263_v46 }
  0x8c   : > { %1519 = vmatpush1.bf16.msra.mxu0 %v2248_v27 }
  0x8d   : > { %1521 = vmatprep.subr.bf16.mxu0 %v2252_v31 }
  0x8e   : > { %1551 = vmatpush1.bf16.msra.mxu1 %v2269_v49 }
  0x8f   : > { %1553 = vmatprep.subr.bf16.mxu1 %v2272_v53 }
  0x90   : > { %1523 = vmatpush1.bf16.msra.mxu0 %v2261_v43 }
  0x91   : > { %1525 = vmatprep.subr.bf16.mxu0 %v2266_v47 }
  0x92   : > { %1555 = vmatpush1.bf16.msra.mxu1 %v2281_v63 }
  0x93   : > { %1557 = vmatprep.subr.bf16.mxu1 %v2284_v1 }
  0x94   : > { %1527 = vmatpush1.bf16.msra.mxu0 %v2275_v56 }
  0x95   : > { %1529 = vmatprep.subr.bf16.mxu0 %v2278_v59 }
  0x96   : > { %1559 = vmatpush1.bf16.msra.mxu1 %v2293_v16 }
  0x97   : > { %1561 = vmatprep.subr.bf16.mxu1 %v2296_v19 }
  0x98   : > { %1531 = vmatpush1.bf16.msra.mxu0 %v2287_v7 }
  0x99   : > { %1533 = vmatprep.subr.bf16.mxu0 %v2290_v11 }
  0x9a   : > { %1563 = vmatpush1.bf16.msra.mxu1 %v2305_v32 }
  0x9b   : > { %1565 = vmatprep.subr.bf16.mxu1 %v2308_v33 }
  0x9c   : > { %1535 = vmatpush1.bf16.msra.mxu0 %v2299_v25 }
  0x9d   : > { %1537 = vmatprep.subr.bf16.mxu0 %v2302_v28 }
  0x9e   : > { %1567 = vmatpush1.bf16.msra.mxu1 %v2315_v41 }
  0x9f   : > { %1569 = vmatprep.subr.bf16.mxu1 %v2318_v42 }
  0xa0   : > { %1539 = vmatpush1.bf16.msra.mxu0 %v2311_v40 }
  0xa1   : > { %1573 = vmatprep.subr.bf16.mxu0 %v2228_v4 }
  0xa2   : > { %1571 = vmatpush1.bf16.msra.mxu1 %v2324_v50 }
  0xa3   : > { %1605 = vmatprep.subr.bf16.mxu1 %v2243_v23 }
 0x156   : > { %v374_v54 = vpop.f32.mrb[0].mxu0 }
 0x157   : > { %v450_v55 = vadd.f32 %v374_v54, %v240_v51  ;;  %v376_v57 = vpop.f32.mrb[1].mxu0 }
 0x158   : > { %v451_v58 = vadd.f32 %v376_v57, %v241_v52  ;;  %v445_v0 = vpop.f32.mrb[0].mxu1 }
 0x159   : > { %v1404_v60 = vmul.f32 -1.442695, %v450_v55  ;;  %v447_v4 = vpop.f32.mrb[1].mxu1  ;;  %v452_v6 = vadd.f32 %v445_v0, %v242_v3 }
 0x15a   : > { %v1405_v61 = vmul.f32 -1.442695, %v451_v58  ;;  %v453_v2 = vadd.f32 %v447_v4, %v243_v62 }
 0x15b   : > { %1777 = vpow2.f32 %v1404_v60  ;;  %v730_v60 = vstv %s729_s28 }
 0x15c   : > { %1779 = vpow2.f32 %v1405_v61  ;;  %v1406_v5 = vmul.f32 -1.442695, %v453_v2  ;;  %vm731_vm1 = vcmp.eq.s32.totalorder %v730_v60, 1 }
 0x15e   : > { %1781 = vpow2.f32 %v1406_v5 }
 0x15f   : > { %1783 = vtanh.f32 %v452_v6 }
 0x165   : > { %v1778_v12 = vpop.eup %1777 }
 0x166   : > { %v1780_v13 = vpop.eup %1779  ;;  %v457_v14 = vadd.f32 1.0, %v1778_v12 }
 0x167   : > { %v463_v17 = vadd.f32 1.0, %v1780_v13 }
 0x168   : > { %1785 = vrcp.f32 %v457_v14  ;;  %v1782_v20 = vpop.eup %1781  ;;  %v1011_v14 = vld [vmem:[#allocation7 + $0x60] sm:$0xff] }
 0x169   : > { %1787 = vrcp.f32 %v463_v17  ;;  %v1784_v21 = vpop.eup %1783  ;;  %v470_v30 = vadd.f32 1.0, %v1782_v20  ;;  %v1019_v20 = vld [vmem:[#allocation7 + $0xa0] sm:$0xff] }
 0x16b   : > { %1789 = vrcp.f32 %v470_v30  ;;  %v1023_v30 = vld [vmem:[#allocation7 + $0xc0] sm:$0xff] }
 0x172   : > { %v1786_v24 = vpop.eup %1785 }
 0x173   : > { %v1788_v35 = vpop.eup %1787  ;;  %v474_v36 = vmul.f32 %v1786_v24, %v1784_v21  ;;  %v1028_v24 = vld [vmem:[#allocation7 + $0xe8] sm:$0xff] }
 0x174   : > { %v473_v37 = vmul.f32 %v1788_v35, %v239_v22  ;;  %v1027_v35 = vld [vmem:[#allocation7 + $0xe0] sm:$0xff] }
 0x175   : > { %v1790_v45 = vpop.eup %1789 }
 0x176   : > { %v475_v39 = vadd.f32 %v474_v36, %v473_v37  ;;  %v1650_v36 = vpack.c.bf16 %v1027_v35, %v1023_v30  ;;  %v1032_v37 = vld [vmem:[#allocation7 + $0x108] sm:$0xff] }
 0x178   : > { %1791 = vtanh.f32 %v475_v39  ;;  %v2374_v44 = vsel %vm480_vm0, %v475_v39, %v239_v22  ;;  %v1024_v22 = vld [vmem:[#allocation7 + $0xc8] sm:$0xff] }
 0x179   : > { %v1648_v29 = vpack.c.bf16 %v1028_v24, %v1024_v22  ;;  %v1036_v39 = vld [vmem:[#allocation7 + $0x128] sm:$0xff] }
 0x182   : > { %v1792_v51 = vpop.eup %1791 }
 0x183   : > { %v477_v52 = vmul.f32 %v1792_v51, %v1790_v45  ;;  %v1031_v45 = vld [vmem:[#allocation7 + $0x100] sm:$0xff] }
 0x184   : > { %v1035_v51 = vld [vmem:[#allocation7 + $0x120] sm:$0xff] }
 0x185   : > { %v2377_v54 = vsel %vm480_vm0, %v477_v52, %v2321_v48  ;;  %v1654_v52 = vpack.c.bf16 %v1035_v51, %v1031_v45 }
 0x186   : > { %485 = vst [vmem:[%s2224_s12] sm:$0xff] %v2377_v54  ;;  %624 = vmatmul.mubr.f32.vlgmr.msra.gmra.mrb[2].mxu0 %v2377_v54  ;;  %695 = vmatmul.mubr.f32.vlgmr.msra.gmra.mrb[2].mxu1 %v2377_v54 }
 0x187   : > { %1575 = vmatpush1.bf16.msra.mxu0 %v2232_v9  ;;  %1607 = vmatpush1.bf16.msra.mxu1 %v2245_v26  ;;  %v1407_v9 = vld [vmem:[%s2213_s6 + $0x20] sm:$0xff] }
 0x188   : > { %1577 = vmatprep.subr.bf16.mxu0 %v2234_v10  ;;  %1609 = vmatprep.subr.bf16.mxu1 %v2255_v34  ;;  %v1408_v10 = vld [vmem:[%s2213_s6 + $0x28] sm:$0xff] }
 0x189   : > { %875 = vmatprep.mubr.f32.mxu0 %v2032_v8  ;;  %946 = vmatprep.mubr.f32.mxu1 %v2032_v8 }
 0x18b   : > { %1579 = vmatpush1.bf16.msra.mxu0 %v2238_v15  ;;  %1611 = vmatpush1.bf16.msra.mxu1 %v2257_v38 }
 0x18c   : > { %1581 = vmatprep.subr.bf16.mxu0 %v2241_v18  ;;  %1613 = vmatprep.subr.bf16.mxu1 %v2263_v46 }
 0x18f   : > { %1583 = vmatpush1.bf16.msra.mxu0 %v2248_v27  ;;  %1615 = vmatpush1.bf16.msra.mxu1 %v2269_v49 }
 0x190   : > { %1585 = vmatprep.subr.bf16.mxu0 %v2252_v31  ;;  %1617 = vmatprep.subr.bf16.mxu1 %v2272_v53 }
 0x193   : > { %1587 = vmatpush1.bf16.msra.mxu0 %v2261_v43  ;;  %1619 = vmatpush1.bf16.msra.mxu1 %v2281_v63 }
 0x194   : > { %1589 = vmatprep.subr.bf16.mxu0 %v2266_v47  ;;  %1621 = vmatprep.subr.bf16.mxu1 %v2284_v1 }
 0x197   : > { %1591 = vmatpush1.bf16.msra.mxu0 %v2275_v56  ;;  %1623 = vmatpush1.bf16.msra.mxu1 %v2293_v16 }
 0x198   : > { %1593 = vmatprep.subr.bf16.mxu0 %v2278_v59  ;;  %1625 = vmatprep.subr.bf16.mxu1 %v2296_v19 }
 0x19b   : > { %1595 = vmatpush1.bf16.msra.mxu0 %v2287_v7  ;;  %1627 = vmatpush1.bf16.msra.mxu1 %v2305_v32  ;;  %v1410_v7 = vld [vmem:[%s2213_s6 + $0x38] sm:$0xff] }
 0x19c   : > { %1597 = vmatprep.subr.bf16.mxu0 %v2290_v11  ;;  %1629 = vmatprep.subr.bf16.mxu1 %v2308_v33 }
 0x19f   : > { %1599 = vmatpush1.bf16.msra.mxu0 %v2299_v25  ;;  %1631 = vmatpush1.bf16.msra.mxu1 %v2315_v41  ;;  %v1409_v25 = vld [vmem:[%s2213_s6 + $0x30] sm:$0xff] }
 0x1a0   : > { %1601 = vmatprep.subr.bf16.mxu0 %v2302_v28  ;;  %1633 = vmatprep.subr.bf16.mxu1 %v2318_v42 }
 0x1a3   : > { %1603 = vmatpush1.bf16.msra.mxu0 %v2311_v40  ;;  %1635 = vmatpush1.bf16.msra.mxu1 %v2324_v50 }
 0x1a4   : > { %1669 = vmatprep.subr.bf16.mxu1 %v2243_v23 }
 0x259   : > { %v625_v15 = vpop.f32.mrb[2].mxu0  ;;  %v696_v18 = vpop.f32.mrb[2].mxu1 }
 0x25a   : > { %v701_v27 = vadd.f32 %v1407_v9, %v625_v15  ;;  %v627_v31 = vpop.f32.mrb[3].mxu0  ;;  %v698_v43 = vpop.f32.mrb[3].mxu1  ;;  %v703_v40 = vadd.f32 %v1409_v25, %v696_v18  ;;  %v1044_v9 = vld [vmem:[#allocation7 + $0x168] sm:$0xff]  ;;  %v1039_v15 = vld [vmem:[#allocation7 + $0x140] sm:$0xff] }
 0x25b   : > { %v702_v47 = vadd.f32 %v1408_v10, %v627_v31  ;;  %v704_v11 = vadd.f32 %v1410_v7, %v698_v43  ;;  %v1043_v18 = vld [vmem:[#allocation7 + $0x160] sm:$0xff]  ;;  %v1048_v31 = vld [vmem:[#allocation7 + $0x188] sm:$0xff] }
 0x25c   : > { %v1411_v56 = vmul.f32 -1.442695, %v701_v27  ;;  %v1658_v27 = vpack.c.bf16 %v1043_v18, %v1039_v15  ;;  %v1052_v43 = vld [vmem:[#allocation7 + $0x1a8] sm:$0xff]  ;;  %v1426_v18 = vld [vmem:[%s2213_s6 + $0x78] sm:$0xff] }
 0x25d   : > { %v1412_v59 = vmul.f32 -1.442695, %v702_v47  ;;  %v1413_v28 = vmul.f32 -1.442695, %v704_v11  ;;  %v1660_v47 = vpack.c.bf16 %v1052_v43, %v1048_v31  ;;  %v1056_v11 = vld [vmem:[#allocation7 + $0x1c8] sm:$0xff] }
 0x25e   : > { %1793 = vpow2.f32 %v1411_v56  ;;  %v1047_v56 = vld [vmem:[#allocation7 + $0x180] sm:$0xff]  ;;  %v1060_v25 = vld [vmem:[#allocation7 + $0x1e8] sm:$0xff] }
 0x25f   : > { %1795 = vpow2.f32 %v1412_v59  ;;  %v1051_v59 = vld [vmem:[#allocation7 + $0x1a0] sm:$0xff] }
 0x260   : > { %1797 = vpow2.f32 %v1413_v28  ;;  %v1662_v7 = vpack.c.bf16 %v1051_v59, %v1047_v56  ;;  %v1058_v28 = vld [vmem:[#allocation7 + $0x1d8] sm:$0xff] }
 0x261   : > { %1799 = vtanh.f32 %v703_v40  ;;  %v1664_v40 = vpack.c.bf16 %v1060_v25, %v1056_v11 }
 0x268   : > { %v1794_v42 = vpop.eup %1793 }
 0x269   : > { %v1796_v23 = vpop.eup %1795  ;;  %v708_v48 = vadd.f32 1.0, %v1794_v42  ;;  %v1062_v42 = vld [vmem:[#allocation7 + $0x1f8] sm:$0xff] }
 0x26a   : > { %v714_v50 = vadd.f32 1.0, %v1796_v23  ;;  %v1798_v55 = vpop.eup %1797  ;;  %v1055_v23 = vld [vmem:[#allocation7 + $0x1c0] sm:$0xff] }
 0x26b   : > { %1801 = vrcp.f32 %v708_v48  ;;  %v1800_v57 = vpop.eup %1799  ;;  %v721_v0 = vadd.f32 1.0, %v1798_v55  ;;  %v1059_v48 = vld [vmem:[#allocation7 + $0x1e0] sm:$0xff] }
 0x26c   : > { %1803 = vrcp.f32 %v714_v50  ;;  %v1696_v50 = vpack.c.bf16 %v1062_v42, %v1058_v28  ;;  %v1666_v55 = vpack.c.bf16 %v1059_v48, %v1055_v23 }
 0x26d   : > { %1805 = vrcp.f32 %v721_v0 }
 0x275   : > { %v1802_v58 = vpop.eup %1801 }
 0x276   : > { %v1804_v61 = vpop.eup %1803  ;;  %v725_v62 = vmul.f32 %v1802_v58, %v1800_v57  ;;  %v1057_v57 = vld [vmem:[#allocation7 + $0x1d0] sm:$0xff] }
 0x277   : > { %v724_v4 = vmul.f32 %v1804_v61, %v2374_v44  ;;  %v1806_v5 = vpop.eup %1805  ;;  %v1061_v58 = vld [vmem:[#allocation7 + $0x1f0] sm:$0xff]  ;;  %v1415_v61 = vld [vmem:[%s2213_s6 + $0x40] sm:$0xff] }
 0x278   : > { %v1698_v60 = vpack.c.bf16 %v1061_v58, %v1057_v57 }
 0x279   : > { %v726_v2 = vadd.f32 %v725_v62, %v724_v4  ;;  %v1416_v62 = vld [vmem:[%s2213_s6 + $0x48] sm:$0xff] }
 0x27b   : > { %1807 = vtanh.f32 %v726_v2  ;;  %v2423_v3 = vsel %vm731_vm1, %v726_v2, %v2374_v44  ;;  %v1652_v44 = vpack.c.bf16 %v1036_v39, %v1032_v37  ;;  %v1423_v39 = vld [vmem:[%s2213_s6 + $0x60] sm:$0xff] }
 0x285   : > { %v1808_v6 = vpop.eup %1807 }
 0x286   : > { %v728_v12 = vmul.f32 %v1808_v6, %v1806_v5 }
 0x288   : > { %v2426_v13 = vsel %vm731_vm1, %v728_v12, %v2377_v54  ;;  %v1040_v54 = vld [vmem:[#allocation7 + $0x148] sm:$0xff] }
 0x289   : > { %1414 = vst [vmem:[%s2224_s12 + $0x8] sm:$0xff] %v2426_v13  ;;  %876 = vmatmul.mubr.f32.vlgmr.msra.gmra.mrb[4].mxu0 %v2426_v13  ;;  %947 = vmatmul.mubr.f32.vlgmr.msra.gmra.mrb[4].mxu1 %v2426_v13  ;;  %v1656_v10 = vpack.c.bf16 %v1044_v9, %v1040_v54 }
 0x28a   : > { %1671 = vmatpush1.bf16.msra.mxu1 %v2245_v26  ;;  %1127 = vmatprep.mubr.f32.mxu0 %v2032_v8  ;;  %v1004_v26 = vld [vmem:[#allocation7 + $0x28] sm:$0xff] }
 0x28b   : > { %1673 = vmatprep.subr.bf16.mxu1 %v2255_v34  ;;  %1198 = vmatprep.mubr.f32.mxu1 %v2032_v8  ;;  %v1000_v8 = vld [vmem:[#allocation7 + $0x8] sm:$0xff] }
 0x28c   : > { %v1636_v34 = vpack.c.bf16 %v1004_v26, %v1000_v8 }
 0x28e   : > { %1675 = vmatpush1.bf16.msra.mxu1 %v2257_v38  ;;  %v999_v38 = vld [vmem:[#allocation7] sm:$0xff]  ;;  %1637 = vmatprep.subr.bf16.mxu0 %v1636_v34  ;;  %v1418_v34 = vld [vmem:[%s2213_s6 + $0x58] sm:$0xff] }
 0x28f   : > { %1677 = vmatprep.subr.bf16.mxu1 %v2263_v46  ;;  %v1003_v46 = vld [vmem:[#allocation7 + $0x20] sm:$0xff] }
 0x292   : > { %1679 = vmatpush1.bf16.msra.mxu1 %v2269_v49  ;;  %v1638_v49 = vpack.c.bf16 %v1003_v46, %v999_v38  ;;  %v1417_v46 = vld [vmem:[%s2213_s6 + $0x50] sm:$0xff] }
 0x293   : > { %1681 = vmatprep.subr.bf16.mxu1 %v2272_v53  ;;  %v1008_v53 = vld [vmem:[#allocation7 + $0x48] sm:$0xff] }
 0x294   : > { %1639 = vmatpush1.bf16.msra.mxu0 %v1638_v49 }
 0x296   : > { %1683 = vmatpush1.bf16.msra.mxu1 %v2281_v63  ;;  %v1012_v63 = vld [vmem:[#allocation7 + $0x68] sm:$0xff] }
 0x297   : > { %1685 = vmatprep.subr.bf16.mxu1 %v2284_v1  ;;  %v1640_v1 = vpack.c.bf16 %v1012_v63, %v1008_v53 }
 0x299   : > { %1641 = vmatprep.subr.bf16.mxu0 %v1640_v1 }
 0x29a   : > { %1687 = vmatpush1.bf16.msra.mxu1 %v2293_v16  ;;  %v1007_v16 = vld [vmem:[#allocation7 + $0x40] sm:$0xff] }
 0x29b   : > { %1689 = vmatprep.subr.bf16.mxu1 %v2296_v19  ;;  %v1642_v19 = vpack.c.bf16 %v1011_v14, %v1007_v16 }
 0x29d   : > { %1643 = vmatpush1.bf16.msra.mxu0 %v1642_v19 }
 0x29e   : > { %1691 = vmatpush1.bf16.msra.mxu1 %v2305_v32  ;;  %v1016_v32 = vld [vmem:[#allocation7 + $0x88] sm:$0xff] }
 0x29f   : > { %1693 = vmatprep.subr.bf16.mxu1 %v2308_v33  ;;  %v1020_v33 = vld [vmem:[#allocation7 + $0xa8] sm:$0xff] }
 0x2a0   : > { %v1644_v17 = vpack.c.bf16 %v1020_v33, %v1016_v32 }
 0x2a2   : > { %1695 = vmatpush1.bf16.msra.mxu1 %v2315_v41  ;;  %v1015_v41 = vld [vmem:[#allocation7 + $0x80] sm:$0xff]  ;;  %1645 = vmatprep.subr.bf16.mxu0 %v1644_v17  ;;  %v982_v17 = vstv %s981_s10 }
 0x2a3   : > { %v1646_v21 = vpack.c.bf16 %v1019_v20, %v1015_v41  ;;  %1697 = vmatprep.subr.bf16.mxu1 %v1696_v50  ;;  %vm983_vm2 = vcmp.eq.s32.totalorder %v982_v17, 1 }
 0x2a5   : > { %1647 = vmatpush1.bf16.msra.mxu0 %v1646_v21 }
 0x2a6   : > { %1649 = vmatprep.subr.bf16.mxu0 %v1648_v29  ;;  %1699 = vmatpush1.bf16.msra.mxu1 %v1698_v60 }
 0x2a9   : > { %1651 = vmatpush1.bf16.msra.mxu0 %v1650_v36 }
 0x2aa   : > { %1653 = vmatprep.subr.bf16.mxu0 %v1652_v44  ;;  %v1424_v44 = vld [vmem:[%s2213_s6 + $0x68] sm:$0xff] }
 0x2ad   : > { %1655 = vmatpush1.bf16.msra.mxu0 %v1654_v52 }
 0x2ae   : > { %1657 = vmatprep.subr.bf16.mxu0 %v1656_v10 }
 0x2b1   : > { %1659 = vmatpush1.bf16.msra.mxu0 %v1658_v27 }
 0x2b2   : > { %1661 = vmatprep.subr.bf16.mxu0 %v1660_v47 }
 0x2b5   : > { %1663 = vmatpush1.bf16.msra.mxu0 %v1662_v7 }
 0x2b6   : > { %1665 = vmatprep.subr.bf16.mxu0 %v1664_v40  ;;  %v1234_v40 = vstv %s1233_s26 }
 0x2b7   : > { %vm1235_vm3 = vcmp.eq.s32.totalorder %v1234_v40, 1 }
 0x2b9   : > { %1667 = vmatpush1.bf16.msra.mxu0 %v1666_v55 }
 0x35c   : > { %v877_v0 = vpop.f32.mrb[4].mxu0  ;;  %v948_v4 = vpop.f32.mrb[4].mxu1 }
 0x35d   : > { %v953_v2 = vadd.f32 %v1415_v61, %v877_v0  ;;  %v879_v5 = vpop.f32.mrb[5].mxu0  ;;  %v950_v6 = vpop.f32.mrb[5].mxu1  ;;  %v955_v53 = vadd.f32 %v1417_v46, %v948_v4 }
 0x35e   : > { %v954_v12 = vadd.f32 %v1416_v62, %v879_v5  ;;  %v956_v38 = vadd.f32 %v1418_v34, %v950_v6 }
 0x35f   : > { %v1419_v8 = vmul.f32 -1.442695, %v953_v2 }
 0x360   : > { %v1420_v26 = vmul.f32 -1.442695, %v954_v12  ;;  %v1421_v49 = vmul.f32 -1.442695, %v956_v38 }
 0x361   : > { %1809 = vpow2.f32 %v1419_v8 }
 0x362   : > { %1811 = vpow2.f32 %v1420_v26 }
 0x363   : > { %1813 = vpow2.f32 %v1421_v49 }
 0x364   : > { %1815 = vtanh.f32 %v955_v53 }
 0x36b   : > { %v1810_v63 = vpop.eup %1809 }
 0x36c   : > { %v1812_v1 = vpop.eup %1811  ;;  %v960_v16 = vadd.f32 1.0, %v1810_v63 }
 0x36d   : > { %v966_v14 = vadd.f32 1.0, %v1812_v1  ;;  %v1814_v19 = vpop.eup %1813 }
 0x36e   : > { %1817 = vrcp.f32 %v960_v16  ;;  %v1816_v32 = vpop.eup %1815  ;;  %v973_v21 = vadd.f32 1.0, %v1814_v19 }
 0x36f   : > { %1819 = vrcp.f32 %v966_v14 }
 0x370   : > { %1821 = vrcp.f32 %v973_v21 }
 0x378   : > { %v1818_v33 = vpop.eup %1817 }
 0x379   : > { %v1820_v41 = vpop.eup %1819  ;;  %v977_v20 = vmul.f32 %v1818_v33, %v1816_v32 }
 0x37a   : > { %v976_v22 = vmul.f32 %v1820_v41, %v2423_v3  ;;  %v1822_v30 = vpop.eup %1821 }
 0x37c   : > { %v978_v24 = vadd.f32 %v977_v20, %v976_v22 }
 0x37e   : > { %1823 = vtanh.f32 %v978_v24  ;;  %v985_v29 = vsel %vm983_vm2, %v978_v24, %v2423_v3 }
 0x388   : > { %v1824_v35 = vpop.eup %1823 }
 0x389   : > { %v980_v36 = vmul.f32 %v1824_v35, %v1822_v30 }
 0x38b   : > { %v984_v37 = vsel %vm983_vm2, %v980_v36, %v2426_v13  ;;  %v1425_v13 = vld [vmem:[%s2213_s6 + $0x70] sm:$0xff] }
 0x38c   : > { %1422 = vst [vmem:[%s2224_s12 + $0x10] sm:$0xff] %v984_v37  ;;  %1128 = vmatmul.mubr.f32.vlgmr.msra.gmra.mrb[6].mxu0 %v984_v37  ;;  %1199 = vmatmul.mubr.f32.vlgmr.msra.gmra.mrb[6].mxu1 %v984_v37 }
 0x45f   : > { %v1129_v45 = vpop.f32.mrb[6].mxu0  ;;  %v1200_v51 = vpop.f32.mrb[6].mxu1 }
 0x460   : > { %v1205_v52 = vadd.f32 %v1423_v39, %v1129_v45  ;;  %v1131_v54 = vpop.f32.mrb[7].mxu0  ;;  %v1202_v9 = vpop.f32.mrb[7].mxu1  ;;  %v1207_v43 = vadd.f32 %v1425_v13, %v1200_v51 }
 0x461   : > { %v1206_v10 = vadd.f32 %v1424_v44, %v1131_v54  ;;  %v1208_v27 = vadd.f32 %v1426_v18, %v1202_v9 }
 0x462   : > { %v1427_v3 = vmul.f32 -1.442695, %v1205_v52 }
 0x463   : > { %v1428_v15 = vmul.f32 -1.442695, %v1206_v10  ;;  %v1429_v31 = vmul.f32 -1.442695, %v1208_v27 }
 0x464   : > { %1825 = vpow2.f32 %v1427_v3 }
 0x465   : > { %1827 = vpow2.f32 %v1428_v15 }
 0x466   : > { %1829 = vpow2.f32 %v1429_v31 }
 0x467   : > { %1831 = vtanh.f32 %v1207_v43 }
 0x46e   : > { %v1826_v47 = vpop.eup %1825 }
 0x46f   : > { %v1828_v56 = vpop.eup %1827  ;;  %v1212_v59 = vadd.f32 1.0, %v1826_v47 }
 0x470   : > { %v1218_v7 = vadd.f32 1.0, %v1828_v56  ;;  %v1830_v11 = vpop.eup %1829 }
 0x471   : > { %1833 = vrcp.f32 %v1212_v59  ;;  %v1832_v25 = vpop.eup %1831  ;;  %v1225_v48 = vadd.f32 1.0, %v1830_v11 }
 0x472   : > { %1835 = vrcp.f32 %v1218_v7 }
 0x473   : > { %1837 = vrcp.f32 %v1225_v48 }
 0x47b   : > { %v1834_v28 = vpop.eup %1833 }
 0x47c   : > { %v1836_v42 = vpop.eup %1835  ;;  %v1229_v23 = vmul.f32 %v1834_v28, %v1832_v25 }
 0x47d   : > { %v1228_v50 = vmul.f32 %v1836_v42, %v985_v29  ;;  %v1838_v58 = vpop.eup %1837 }
 0x47f   : > { %v1230_v55 = vadd.f32 %v1229_v23, %v1228_v50 }
 0x481   : > { %1839 = vtanh.f32 %v1230_v55  ;;  %v1237_v57 = vsel %vm1235_vm3, %v1230_v55, %v985_v29 }
 0x482   : > { %1239 = vst [vmem:[#allocation3] sm:$0xff] %v1237_v57 }
 0x489   : > { %1245 = sbr.rel (%p1431_p3) target bundleno = 1176 (0x498), region = 44  ;;  %v1248_v4 = vld [vmem:[#allocation3] sm:$0xff] (!%p1431_p3) }
 0x48a   : > { %1249 = vst [vmem:[#allocation12] sm:$0xff] (!%p1431_p3), %v1248_v4 }
 0x48b   : > { %v1840_v60 = vpop.eup %1839 }
 0x48c   : > { %v1232_v61 = vmul.f32 %v1840_v60, %v1838_v58 }
 0x48e   : > { %v1236_v62 = vsel %vm1235_vm3, %v1232_v61, %v984_v37 }
 0x48f   : > { %1238 = vst [vmem:[#allocation2] sm:$0xff] %v1236_v62  ;;  %1430 = vst [vmem:[%s2224_s12 + $0x18] sm:$0xff] %v1236_v62 }
 0x496   : > { %v1246_v0 = vld [vmem:[#allocation2] sm:$0xff] }
 0x497   : > { %1247 = vst [vmem:[#allocation10] sm:$0xff] %v1246_v0 }
 0x498 PF: > { %s2033_s8 = smov [#allocation10]   ;;  %s1443_s14 = sshll.u32 %s2084_s19, 9 }
 0x499   : > { %s1278_s25 = sshll.u32 %s2033_s8, 4  ;;  %s2467_s6 = scalar_lea.hbm %s2556_s2, %s1443_s14  ;;  %s1279_s25 = int_to_ptr.vmem [resolvable:$true] %s1278_s25 }
 0x49a   : > { %s1899_s23 = scalar_lea.vmem %s1279_s25, 128  ;;  %p2574_p10 = scmp.eq.s32.totalorder %s2084_s19, 1 }
 0x49b   : > { %p1900_p7 = scmp.ne.s32.totalorder %s1279_s25, %s1899_s23  ;;  %p1906_p5 = scmp.lt.s32.totalorder %s1279_s25, %s1279_s25 }
 0x49c   : > { %p1907_p12 = scmp.lt.s32.totalorder %s1899_s23, %s1899_s23 }
 0x49d   : > { %p1901_p1 = pnand %p1900_p7, %p2574_p10 }
 0x49e   : > { %p1908_p2 = por %p1907_p12, %p1906_p5 }
 0x49f   : > { %p1902_p0 = pneg %p1901_p1 }
 0x4a1   : > { %p1909_p4 = pnand %p1908_p2, %p1902_p0 }
 0x4a3   : > { %1912 = shalt.err (!%p1909_p4)
}
 0x4a4   : > { %s1913_s9 = scalar_lea.hbm %s2557_s3, 128  ;;  %p2575_p8 = pmov %p2574_p10 }
 0x4a5   : > { %p1914_p6 = scmp.ne.s32.totalorder %s2557_s3, %s1913_s9  ;;  %p1919_p3 = scmp.lt.u32.totalorder %s1913_s9, %s2557_s3 }
 0x4a7   : > { %p1915_p9 = pnand %p1914_p6, %p2575_p8 }
 0x4a9   : > { %p1916_p13 = pneg %p1915_p9 }
 0x4ab   : > { %p1921_p7 = pnand %p1919_p3, %p1916_p13 }
 0x4ad   : > { %1924 = shalt.err (!%p1921_p7)
}
 0x4ae   : > { %p2576_p10 = pmov %p2575_p8  ;;  %s1264_s14 = sshll.u32 %s2224_s12, 4  ;;  %s2488_s14 = int_to_ptr.vmem [resolvable:$true] %s1264_s14 }
 0x4af   : > { %s1251_s20 = scalar_lea.sflag [#allocation6], %s2209_s11  ;;  %s1925_s5 = scalar_lea.vmem %s2488_s14, 512 }
 0x4b0   : > { %1708 = dma.vmem_to_hbm [thread:$0]  (%p2576_p10), %s1279_s25, 128, %s2557_s3, [#allocation11]  }
 0x4b1   : > { %p1926_p1 = scmp.ne.s32.totalorder %s2488_s14, %s1925_s5  ;;  %s2034_s23 = smov [#allocation9]  }
 0x4b2   : > { %s1929_s21 = sshll.u32 %s2034_s23, 4  ;;  %s1930_s21 = int_to_ptr.vmem [resolvable:$false] %s1929_s21 }
 0x4b3   : > { %p1927_p0 = pnand %p1926_p1, %p2158_p11  ;;  %s1931_s13 = scalar_lea.vmem %s1930_s21, 1024 }
 0x4b4   : > { %p1932_p12 = scmp.lt.s32.totalorder %s2488_s14, %s1930_s21  ;;  %p1933_p2 = scmp.lt.s32.totalorder %s1931_s13, %s1925_s5 }
 0x4b5   : > { %p1928_p5 = pneg %p1927_p0 }
 0x4b6   : > { %p1934_p4 = por %p1933_p2, %p1932_p12 }
 0x4b8   : > { %p1935_p6 = pnand %p1934_p4, %p1928_p5 }
 0x4ba   : > { %1938 = shalt.err (!%p1935_p6)
}
 0x4bb   : > { %s1939_s12 = scalar_lea.hbm %s2467_s6, 512  ;;  %s1943_s28 = scalar_lea.hbm %s2556_s2, 1024 }
 0x4bc   : > { %p1940_p8 = scmp.ne.s32.totalorder %s2467_s6, %s1939_s12  ;;  %p1944_p3 = scmp.lt.u32.totalorder %s2467_s6, %s2556_s2 }
 0x4bd   : > { %p1945_p7 = scmp.lt.u32.totalorder %s1943_s28, %s1939_s12  ;;  %p1947_p1 = scmp.lt.u32.totalorder %s1939_s12, %s2467_s6 }
 0x4be   : > { %p1941_p9 = pnand %p1940_p8, %p2158_p11 }
 0x4bf   : > { %p1946_p10 = por %p1945_p7, %p1944_p3 }
 0x4c0   : > { %p1942_p13 = pneg %p1941_p9 }
 0x4c1   : > { %p1948_p0 = por %p1947_p1, %p1946_p10 }
 0x4c3   : > { %p1949_p5 = pnand %p1948_p0, %p1942_p13 }
 0x4c5   : > { %1952 = shalt.err (!%p1949_p5)
}
 0x4c6   : > { %s2035_s7 = smov 128   ;;  %s2036_s26 = smov 8  }
 0x4c7   : > { %1706 = dma.vmem_to_hbm [thread:$0]  (%p2158_p11), %s2488_s14, 512, %s2467_s6, %s1251_s20, %s2035_s7, %s2035_s7, %s2036_s26  }
 0x4c8   : > { %s2037_s8 = smov [#allocation12]   ;;  %p2577_p2 = scmp.eq.s32.totalorder %s2084_s19, 1 }
 0x4c9   : > { %s1289_s5 = sshll.u32 %s2037_s8, 4  ;;  %s1290_s5 = int_to_ptr.vmem [resolvable:$true] %s1289_s5 }
 0x4ca   : > { %s1953_s23 = scalar_lea.vmem %s1290_s5, 128  ;;  %p1960_p8 = scmp.lt.s32.totalorder %s1290_s5, %s1290_s5 }
 0x4cb   : > { %p1954_p12 = scmp.ne.s32.totalorder %s1290_s5, %s1953_s23  ;;  %p1961_p9 = scmp.lt.s32.totalorder %s1953_s23, %s1953_s23 }
 0x4cd   : > { %p1955_p4 = pnand %p1954_p12, %p2577_p2  ;;  %p1962_p13 = por %p1961_p9, %p1960_p8 }
 0x4cf   : > { %p1956_p6 = pneg %p1955_p4 }
 0x4d1   : > { %p1963_p3 = pnand %p1962_p13, %p1956_p6 }
 0x4d3   : > { %1966 = shalt.err (!%p1963_p3)
}
 0x4d4   : > { %s1967_s30 = scalar_lea.hbm %s2558_s4, 128  ;;  %p2578_p7 = pmov %p2577_p2 }
 0x4d5   : > { %p1968_p11 = scmp.ne.s32.totalorder %s2558_s4, %s1967_s30  ;;  %p1973_p0 = scmp.lt.u32.totalorder %s1967_s30, %s2558_s4 }
 0x4d7   : > { %p1969_p10 = pnand %p1968_p11, %p2578_p7 }
 0x4d9   : > { %p1970_p1 = pneg %p1969_p10 }
 0x4db   : > { %p1975_p5 = pnand %p1973_p0, %p1970_p1 }
 0x4dd   : > { %1978 = shalt.err (!%p1975_p5)
}
 0x4de   : > { %p2579_p12 = pmov %p2577_p2 }
 0x4e0   : > { %1710 = dma.vmem_to_hbm [thread:$0]  (%p2579_p12), %s1290_s5, 128, %s2558_s4, [#allocation11]  }
 0x4e1   : > { %2004 = dma.done.wait (%p2577_p2), [#allocation11], 256   ;;  %p2580_p4 = pmov %p2577_p2 }
 0x4e3   : > { %2006 = vsyncadd (%p2580_p4), [#allocation11], 4294967040 }
 0x4e4 PF: > { %s1309_s9 = sand.u32 1, %s2013_s15   ;;  %p2581_p6 = scmp.ne.s32.totalorder %s2563_s22, 0 }
 0x4e5   : > { %p2582_p8 = scmp.ge.s32.totalorder %s2025_s18, 2  ;;  %s1310_s28 = scalar_lea.sflag [#allocation6], %s1309_s9 }
 0x4e7   : > { %p1725_p9 = pnand %p2582_p8, %p2581_p6 }
 0x4e9   : > { %2008 = dma.done.wait (!%p1725_p9), %s1310_s28, 512  }
 0x4ea   : > { %2010 = vsyncadd (!%p1725_p9), %s1310_s28, 4294966784  ;;  %p20_p13 = scmp.ge.s32.totalorder %s2120_s27, 4   ;;  %s2583_s15 = smov %s2017_s16 }
 0x4eb   : > { %s2584_s16 = smov %s2021_s17  ;;  %s2585_s17 = smov %s2154_s24 }
 0x4ec   : > { %s2586_s18 = smov %s2120_s27  ;;  %22 = sbr.rel (!%p20_p13) target bundleno = 7 (0x7), region = 107 }
 0x4f3   :  { %1315 = vsyncpa [#allocation5], 1 }
 0x4f4   :  { %1317 = vsyncpa [#allocation5 + $0x1], 1 }
 0x4f5   :  { %1318 = vsyncpa [#allocation8], 1 }
 0x4f6   :  { %1319 = vsyncpa [#allocation6], 1 }
 0x4f7   :  { %1321 = vsyncpa [#allocation6 + $0x1], 1 }
 0x4f8   :  { %1322 = vsyncpa [#allocation11], 1 }

</bundles_post_ra>
